<compile_context>
chip_gen: v7x
topology: tpu7x:2x2x1
jax: 0.10.0
libtpu: 0.0.40
codegen_flags: <defaults>
</compile_context>

<pallas_src>
import functools

import jax
import jax.numpy as jnp
from jax import lax
from jax.experimental import pallas as pl
from jax.experimental.pallas import tpu as pltpu


def _round_up(n, m):
    return (n + m - 1) // m * m


def attn_pool_kernel(x_ref, w1_ref, b1_ref, w2_ref, o_ref, *, d_valid):
    # x_ref: (TB, Dp, F)  w1: (F, Hp)  b1: (1, Hp)  w2 row: (1, Hp)  o: (TB, F)
    TB, Dp, F = x_ref.shape
    Hp = w1_ref.shape[1]

    # ---- Linear(F -> H) + ReLU: one big-M MXU matmul -----------------------
    # Dp is a multiple of 8 (wrapper pads if needed), so this reshape is a
    # free re-tiling, not a relayout copy.
    x2d = x_ref[...].reshape(TB * Dp, F)
    h = jnp.dot(x2d, w1_ref[...], preferred_element_type=jnp.float32)
    h = jnp.maximum(h + b1_ref[...], 0.0)                        # (TB*Dp, Hp)

    # ---- Linear(H -> 1) as VPU multiply + lane reduction (no N=1 matmul) ---
    # b2 is omitted: a constant shift of every score cancels in the softmax.
    s = jnp.sum(h.reshape(TB, Dp, Hp) * w2_ref[...], axis=-1)    # (TB, Dp)

    if d_valid != Dp:
        # Zero-padded D rows still produce score relu(b1)·w2; they must be
        # masked to -inf so they receive zero attention weight.
        d_ids = lax.broadcasted_iota(jnp.int32, (TB, Dp), 1)
        s = jnp.where(d_ids < d_valid, s, -jnp.inf)

    # ---- softmax over D (dim=1 of the original [B, D, 1]) ------------------
    m = jnp.max(s, axis=-1, keepdims=True)
    e = jnp.exp(s - m)
    a = e / jnp.sum(e, axis=-1, keepdims=True)   # exact divide (EUP has slack)

    # ---- pooled output as ONE block-diagonal MXU matmul --------------------
    # A[t, u*Dp + d] = a[t, d] if u == t else 0, so
    #   (A @ x2d)[t, f] = sum_d a[t, d] * x[t, d, f]
    # with M = TB instead of a chain of TB tiny M=1 matvecs.
    col = lax.broadcasted_iota(jnp.int32, (TB, TB * Dp), 1)
    lo = lax.broadcasted_iota(jnp.int32, (TB, TB * Dp), 0) * Dp
    a_tiled = jnp.concatenate([a] * TB, axis=-1)                 # (TB, TB*Dp)
    block_diag = jnp.where((col >= lo) & (col < lo + Dp), a_tiled, 0.0)
    # Re-read x from the (VMEM-resident) ref so the big (TB, Dp, F) value is
    # not held live across the first matmul + softmax.
    o = jnp.dot(block_diag, x_ref[...].reshape(TB * Dp, F),
                preferred_element_type=jnp.float32)              # (TB, F)
    o_ref[...] = o.astype(o_ref.dtype)


def _vmem_estimate(tb, Dp, F, Hp, itemsize=4):
    """Rough per-grid-step VMEM usage: x/out pipeline double buffers, weight
    buffers, the f32 h intermediate, the block-diag A matrix, and the
    in-kernel x value copy."""
    return itemsize * (
        2 * tb * Dp * F            # x block, double-buffered pipeline
        + tb * Dp * F              # in-kernel x value
        + 3 * tb * F               # out block (2x pipeline) + f32 result
        + 2 * (F * Hp + 2 * Hp)    # w1/b1/w2 (double-buffered, conservative)
        + tb * Dp * Hp             # h intermediate (f32)
        + tb * tb * Dp             # block-diagonal A matrix (f32)
    )


def _pick_tb(B, Dp, F, Hp, itemsize=4, vmem_budget_bytes=40 << 20):
    """Largest batch tile TB such that the FULL VMEM estimate fits the budget,
    preferring sublane-aligned TB and an even number of grid steps >= 2 (even
    split across v7x's two TensorCores)."""
    def fits(tb):
        return _vmem_estimate(tb, Dp, F, Hp, itemsize) <= vmem_budget_bytes

    divisors = [tb for tb in range(1, B + 1) if B % tb == 0]
    aligned = [tb for tb in divisors if (tb % 8 == 0 or tb == B) and fits(tb)]
    cands = aligned or [tb for tb in divisors if fits(tb)] or [1]
    even = [tb for tb in cands if (B // tb) >= 2 and (B // tb) % 2 == 0]
    multi = [tb for tb in cands if (B // tb) >= 2]
    tb = max(even) if even else (max(multi) if multi else max(cands))
    return tb, _vmem_estimate(tb, Dp, F, Hp, itemsize)


def attention_pooling(x, w1, b1, w2, b2=None):
    """x: (B, D, F) f32; w1: (F, H); b1: (H,); w2: (H, 1); b2 unused (it is a
    constant shift of every score and cancels in the softmax). Returns (B, F)."""
    B, D, F = x.shape
    H = w1.shape[1]
    del b2  # softmax shift invariance

    # Pad only the tiny weights' hidden dim to lane width (128).  Exact:
    # padded h columns are relu(0) = 0 and carry zero w2 weight.
    Hp = _round_up(H, 128)
    w1p = jnp.pad(w1, ((0, 0), (0, Hp - H)))
    b1p = jnp.pad(b1.reshape(1, H), ((0, 0), (0, Hp - H)))
    w2p = jnp.pad(w2.reshape(1, H), ((0, 0), (0, Hp - H)))

    # x is NOT padded along F (no HBM copy of the largest tensor).  D is
    # padded to a sublane multiple only if ragged (padded rows masked to -inf
    # in-kernel) so the in-kernel reshape stays a free re-tiling.
    Dp = _round_up(D, 8)
    xp = jnp.pad(x, ((0, 0), (0, Dp - D), (0, 0))) if Dp != D else x

    itemsize = xp.dtype.itemsize
    TB, vmem_est = _pick_tb(B, Dp, F, Hp, itemsize)
    grid = (B // TB,)
    # Derive the scoped VMEM limit from the same estimate; cap at 48 MiB so a
    # tile sized here still leaves headroom on v7x's 64 MiB per-TC VMEM.
    vmem_limit = int(min(48 << 20, max(32 << 20, 2 * vmem_est)))

    cost = pl.CostEstimate(
        flops=(2 * B * Dp * F * Hp        # Linear(F->H) on the MXU
               + 4 * B * Dp * Hp          # bias + ReLU + score mul/reduce
               + 2 * B * TB * Dp * F),    # block-diagonal pooling matmul
        transcendentals=B * Dp,           # exp in softmax
        bytes_accessed=(B * Dp * F + F * Hp + 2 * Hp + B * F) * itemsize,
    )

    kernel = functools.partial(attn_pool_kernel, d_valid=D)

    out = pl.pallas_call(
        kernel,
        out_shape=jax.ShapeDtypeStruct((B, F), x.dtype),
        grid_spec=pltpu.PrefetchScalarGridSpec(
            num_scalar_prefetch=0,
            grid=grid,
            in_specs=[
                pl.BlockSpec((TB, Dp, F), lambda b: (b, 0, 0)),
                # Weight index_maps are constant -> no re-DMA across steps.
                pl.BlockSpec((F, Hp), lambda b: (0, 0)),
                pl.BlockSpec((1, Hp), lambda b: (0, 0)),
                pl.BlockSpec((1, Hp), lambda b: (0, 0)),
            ],
            out_specs=pl.BlockSpec((TB, F), lambda b: (b, 0)),
        ),
        compiler_params=pltpu.CompilerParams(
            dimension_semantics=("parallel",),
            vmem_limit_bytes=vmem_limit,
        ),
        cost_estimate=cost,
    )(xp, w1p, b1p, w2p)

    return out


def attention_pooling_ref(x, w1, b1, w2, b2):
    """Pure-JAX reference matching the PyTorch module semantics (f32-accurate
    matmuls so the comparison is meaningful)."""
    h = jnp.maximum(jnp.einsum("bdf,fh->bdh", x, w1, precision="highest") + b1, 0.0)
    s = jnp.einsum("bdh,ho->bdo", h, w2, precision="highest") + b2
    a = jax.nn.softmax(s, axis=1)
    return jnp.sum(x * a, axis=1)


if __name__ == "__main__":
    # Small deterministic example: B=16 batch, D=16 "sequence", F=64 features.
    B, D, F = 16, 16, 64
    H = F // 2  # hidden_features default = in_features // 2

    key = jax.random.PRNGKey(0)
    kx, k1, k2, k3, k4 = jax.random.split(key, 5)

    x = jax.random.normal(kx, (B, D, F), dtype=jnp.float32)
    w1 = jax.random.normal(k1, (F, H), dtype=jnp.float32) * 0.1
    b1 = jax.random.normal(k2, (H,), dtype=jnp.float32) * 0.1
    w2 = jax.random.normal(k3, (H, 1), dtype=jnp.float32) * 0.1
    b2 = jax.random.normal(k4, (1,), dtype=jnp.float32) * 0.1

    out = jax.block_until_ready(attention_pooling(x, w1, b1, w2, b2))
    ref = attention_pooling_ref(x, w1, b1, w2, b2)

    assert out.shape == (B, F)
    # Exact softmax divide (no approx reciprocal) -> tolerance tightened.
    assert jnp.allclose(out, ref, atol=1e-3, rtol=1e-3), "mismatch vs reference"

    print("KERNEL_OK")
</pallas_src>

<mosaic_0001>
module attributes {stable_mosaic.version = 11 : i64} {
  func.func @attn_pool_kernel(%arg0: i32, %arg1: memref<8x16x64xf32, #tpu.memory_space<vmem>>, %arg2: memref<64x128xf32, #tpu.memory_space<vmem>>, %arg3: memref<1x128xf32, #tpu.memory_space<vmem>>, %arg4: memref<1x128xf32, #tpu.memory_space<vmem>>, %arg5: memref<8x64xf32, #tpu.memory_space<vmem>>) attributes {dimension_semantics = [#tpu.dimension_semantics<parallel>], iteration_bounds = array<i64: 2>, scalar_prefetch = 0 : i64, scratch_operands = 0 : i64, tpu.core_type = #tpu.core_type<tc>, window_params = [{transform_indices = @transform_0, window_bounds = array<i64: 8, 16, 64>}, {pipeline_mode = #tpu.pipeline_mode<synchronous>, transform_indices = @transform_1, window_bounds = array<i64: 64, 128>}, {pipeline_mode = #tpu.pipeline_mode<synchronous>, transform_indices = @transform_2, window_bounds = array<i64: 1, 128>}, {pipeline_mode = #tpu.pipeline_mode<synchronous>, transform_indices = @transform_3, window_bounds = array<i64: 1, 128>}, {transform_indices = @transform_4, window_bounds = array<i64: 8, 64>}]} {
    %c0 = arith.constant 0 : index
    %c0_0 = arith.constant 0 : index
    %c0_1 = arith.constant 0 : index
    %0 = vector.load %arg1[%c0, %c0_0, %c0_1] : memref<8x16x64xf32, #tpu.memory_space<vmem>>, vector<8x16x64xf32>
    %1 = vector.shape_cast %0 : vector<8x16x64xf32> to vector<128x64xf32>
    %c0_2 = arith.constant 0 : index
    %c0_3 = arith.constant 0 : index
    %2 = vector.load %arg2[%c0_2, %c0_3] : memref<64x128xf32, #tpu.memory_space<vmem>>, vector<64x128xf32>
    %cst = arith.constant dense<0.000000e+00> : vector<128x128xf32>
    %3 = tpu.matmul %1, %2, %cst {dimension_numbers = #tpu.dot_dimension_numbers<[1], [0], [0], [1], [0, 0, 1, 1], [], []>} : vector<128x64xf32>, vector<64x128xf32>, vector<128x128xf32> -> vector<128x128xf32>
    %c0_4 = arith.constant 0 : index
    %c0_5 = arith.constant 0 : index
    %4 = vector.load %arg3[%c0_4, %c0_5] : memref<1x128xf32, #tpu.memory_space<vmem>>, vector<1x128xf32>
    %5 = vector.broadcast %4 : vector<1x128xf32> to vector<128x128xf32>
    %6 = arith.addf %3, %5 : vector<128x128xf32>
    %cst_6 = arith.constant 0.000000e+00 : f32
    %7 = vector.broadcast %cst_6 : f32 to vector<128x128xf32>
    %8 = arith.maximumf %6, %7 : vector<128x128xf32>
    %9 = vector.shape_cast %8 : vector<128x128xf32> to vector<8x16x128xf32>
    %c0_7 = arith.constant 0 : index
    %c0_8 = arith.constant 0 : index
    %10 = vector.load %arg4[%c0_7, %c0_8] : memref<1x128xf32, #tpu.memory_space<vmem>>, vector<1x128xf32>
    %11 = vector.shape_cast %10 : vector<1x128xf32> to vector<1x1x128xf32>
    %12 = vector.broadcast %11 : vector<1x1x128xf32> to vector<8x16x128xf32>
    %13 = arith.mulf %9, %12 : vector<8x16x128xf32>
    %cst_9 = arith.constant dense<0.000000e+00> : vector<8x16xf32>
    %14 = vector.multi_reduction <add>, %13, %cst_9 [2] : vector<8x16x128xf32> to vector<8x16xf32>
    %cst_10 = arith.constant dense<0xFF800000> : vector<8xf32>
    %15 = vector.multi_reduction <maximumf>, %14, %cst_10 [1] : vector<8x16xf32> to vector<8xf32>
    %16 = vector.shape_cast %15 : vector<8xf32> to vector<8x1xf32>
    %17 = vector.broadcast %16 : vector<8x1xf32> to vector<8x16xf32>
    %18 = arith.subf %14, %17 : vector<8x16xf32>
    %19 = math.exp %18 : vector<8x16xf32>
    %cst_11 = arith.constant dense<0.000000e+00> : vector<8xf32>
    %20 = vector.multi_reduction <add>, %19, %cst_11 [1] : vector<8x16xf32> to vector<8xf32>
    %21 = vector.shape_cast %20 : vector<8xf32> to vector<8x1xf32>
    %22 = vector.broadcast %21 : vector<8x1xf32> to vector<8x16xf32>
    %23 = arith.divf %19, %22 : vector<8x16xf32>
    %24 = tpu.iota {dimensions = array<i32: 1>} : vector<8x128xi32>
    %25 = tpu.iota {dimensions = array<i32: 0>} : vector<8x128xi32>
    %c16_i32 = arith.constant 16 : i32
    %26 = vector.broadcast %c16_i32 : i32 to vector<8x128xi32>
    %27 = arith.muli %25, %26 : vector<8x128xi32>
    %28 = tpu.concatenate %23, %23, %23, %23, %23, %23, %23, %23 in 1 : vector<8x16xf32>, vector<8x16xf32>, vector<8x16xf32>, vector<8x16xf32>, vector<8x16xf32>, vector<8x16xf32>, vector<8x16xf32>, vector<8x16xf32> -> vector<8x128xf32>
    %29 = arith.cmpi sge, %24, %27 : vector<8x128xi32>
    %c16_i32_12 = arith.constant 16 : i32
    %30 = vector.broadcast %c16_i32_12 : i32 to vector<8x128xi32>
    %31 = arith.addi %27, %30 : vector<8x128xi32>
    %32 = arith.cmpi slt, %24, %31 : vector<8x128xi32>
    %33 = arith.andi %29, %32 : vector<8x128xi1>
    %cst_13 = arith.constant 0.000000e+00 : f32
    %34 = vector.broadcast %cst_13 : f32 to vector<8x128xf32>
    %35 = arith.select %33, %28, %34 : vector<8x128xi1>, vector<8x128xf32>
    %c0_14 = arith.constant 0 : index
    %c0_15 = arith.constant 0 : index
    %c0_16 = arith.constant 0 : index
    %36 = vector.load %arg1[%c0_14, %c0_15, %c0_16] : memref<8x16x64xf32, #tpu.memory_space<vmem>>, vector<8x16x64xf32>
    %37 = vector.shape_cast %36 : vector<8x16x64xf32> to vector<128x64xf32>
    %cst_17 = arith.constant dense<0.000000e+00> : vector<8x64xf32>
    %38 = tpu.matmul %35, %37, %cst_17 {dimension_numbers = #tpu.dot_dimension_numbers<[1], [0], [0], [1], [0, 0, 1, 1], [], []>} : vector<8x128xf32>, vector<128x64xf32>, vector<8x64xf32> -> vector<8x64xf32>
    %c0_18 = arith.constant 0 : index
    %c0_19 = arith.constant 0 : index
    %39 = vector.load %arg5[%c0_18, %c0_19] : memref<8x64xf32, #tpu.memory_space<vmem>>, vector<8x64xf32>
    tpu.vector_store %arg5[%c0_18, %c0_19], %38 {strides = array<i32>} : memref<8x64xf32, #tpu.memory_space<vmem>>, vector<8x64xf32>,
    return
  }
  func.func @transform_0(%arg0: i32) -> (i32, i32, i32) {
    %c0_i32 = arith.constant 0 : i32
    %c0_i32_0 = arith.constant 0 : i32
    %c0_i32_1 = arith.constant 0 : i32
    return %arg0, %c0_i32, %c0_i32_0 : i32, i32, i32
  }
  func.func @transform_1(%arg0: i32) -> (i32, i32) {
    %c0_i32 = arith.constant 0 : i32
    %c0_i32_0 = arith.constant 0 : i32
    %c0_i32_1 = arith.constant 0 : i32
    return %c0_i32, %c0_i32_0 : i32, i32
  }
  func.func @transform_2(%arg0: i32) -> (i32, i32) {
    %c0_i32 = arith.constant 0 : i32
    %c0_i32_0 = arith.constant 0 : i32
    %c0_i32_1 = arith.constant 0 : i32
    return %c0_i32, %c0_i32_0 : i32, i32
  }
  func.func @transform_3(%arg0: i32) -> (i32, i32) {
    %c0_i32 = arith.constant 0 : i32
    %c0_i32_0 = arith.constant 0 : i32
    %c0_i32_1 = arith.constant 0 : i32
    return %c0_i32, %c0_i32_0 : i32, i32
  }
  func.func @transform_4(%arg0: i32) -> (i32, i32) {
    %c0_i32 = arith.constant 0 : i32
    %c0_i32_0 = arith.constant 0 : i32
    return %arg0, %c0_i32 : i32, i32
  }
}

</mosaic_0001>

<bundles_post_ra>
// kernel: tpu_custom_call.1
= control target key start
LH: loop header
LB: loop body
LE: loop exit
PB: predicated region body
PF: predicated region fallthrough
CT: control target
= control target key end

     0   :  { %9 = vsyncpa [#allocation3], 0  ;;  %s3442_s0 = inlined_call_operand.hbm [shape: f32[16,16,64], index: 0, kind: input, shape index: {}]   ;;  %s3443_s1 = inlined_call_operand.hbm [shape: f32[64,128], index: 1, kind: input, shape index: {}]   ;;  %s3444_s2 = inlined_call_operand.vmem [shape: f32[1,128], index: 2, kind: input, shape index: {}]   ;;  %s3445_s3 = inlined_call_operand.vmem [shape: f32[1,128], index: 3, kind: input, shape index: {}]   ;;  %s3446_s4 = inlined_call_operand.hbm [shape: f32[16,64], index: 4, kind: output, shape index: {}]  }
   0x1   :  { %11 = vsyncpa [#allocation3 + $0x1], 0 }
   0x2   :  { %12 = vsyncpa [#allocation6], 0 }
   0x3   :  { %13 = vsyncpa [#allocation4], 0 }
   0x4   :  { %15 = vsyncpa [#allocation4 + $0x1], 0  ;;  %s2321_s15 = smov 0   ;;  %s2323_s16 = smov 0  }
   0x5   :  { %s2325_s17 = smov 0   ;;  %s2327_s18 = smov 0  }
   0x6 LB: > { %s2342_s19 = sadd.s32 4294967295, %s2285_s18   ;;  %s1851_s20 = sadd.s32 4294967294, %s2285_s18   ;;  %s2285_s18 = sphi %s2327_s18, %s3500_s18   ;;  %s2281_s17 = sphi %s2325_s17, %s3499_s17   ;;  %s2277_s16 = sphi %s2323_s16, %s3498_s16   ;;  %s2273_s15 = sphi %s2321_s15, %s3497_s15  }
   0x7   : > { %p41_p0 = scmp.ne.s32.totalorder %s2277_s16, %s2273_s15  ;;  %p3447_p1 = scmp.eq.s32.totalorder %s2342_s19, 0 }
   0x8   : > { %p134_p3 = scmp.eq.s32.totalorder %s1851_s20, 1  ;;  %p1852_p5 = scmp.ge.s32.totalorder %s2285_s18, 1 }
   0x9   : > { %p2351_p4 = por %p3447_p1, %p41_p0  ;;  %p141_p7 = scmp.lt.s32.totalorder %s2285_s18, 3 }
   0xa   : > { %p2356_p6 = por %p134_p3, %p41_p0  ;;  %s2287_s24 = smov [#allocation5]  }
   0xb   : > { %s3458_s21 = scalar_select %p2351_p4, 1, 0 }
   0xc   : > { %s3459_s22 = scalar_select %p2356_p6, 1, 0 }
   0xd   : > { %p2361_p8 = pnand %p1852_p5, %p141_p7  ;;  %s153_s25 = sshll.u32 %s2287_s24, 4  ;;  %s2365_s25 = int_to_ptr.vmem [resolvable:$true] %s153_s25 }
   0xe   : > { %s2377_s27 = sadd.s32 1, %s2285_s18   ;;  %s28_s28 = sadd.s32 1, %s2281_s17 }
   0xf   : > { %s3460_s23 = scalar_select %p2361_p8, 1, 0 }
  0x10   : > { %p2052_p9 = pneg %p2361_p8  ;;  %s25_s29 = ssub.s32 %s2285_s18, %s2377_s27 }
  0x11   : > { %s2157_s6 = scalar_lea.hbm %s3443_s1, 1024 }
  0x12   : > { %p2372_p11 = pnand %p2052_p9, %p3447_p1  ;;  %p2158_p12 = scmp.ne.s32.totalorder %s3443_s1, %s2157_s6 }
  0x13   : > { %p2164_p5 = scmp.lt.u32.totalorder %s2157_s6, %s3443_s1 }
  0x14   : > { %p2159_p13 = pneg %p2372_p11 }
  0x16   : > { %p2160_p0 = pnand %p2159_p13, %p2158_p12 }
  0x18   : > { %p2161_p3 = pneg %p2160_p0 }
  0x1a   : > { %p2166_p7 = pnand %p2164_p5, %p2161_p3 }
  0x1c   : > { %2169 = shalt.err (!%p2166_p7)
}
  0x1d   : > { %s2170_s11 = scalar_lea.vmem %s2365_s25, 1024  ;;  %p2178_p2 = scmp.lt.s32.totalorder %s2365_s25, %s2365_s25 }
  0x1e   : > { %p2171_p9 = scmp.ne.s32.totalorder %s2365_s25, %s2170_s11  ;;  %p2179_p6 = scmp.lt.s32.totalorder %s2170_s11, %s2170_s11 }
  0x20   : > { %p2173_p10 = pnand %p2171_p9, %p2159_p13  ;;  %p2180_p4 = por %p2179_p6, %p2178_p2 }
  0x22   : > { %p2174_p1 = pneg %p2173_p10 }
  0x24   : > { %p2181_p8 = pnand %p2180_p4, %p2174_p1 }
  0x26   : > { %2184 = shalt.err (!%p2181_p8)
}
  0x27   : > { %s2288_s12 = smov 128   ;;  %s2289_s13 = smov 8  }
  0x28   : > { %2055 = dma.hbm_to_vmem [thread:$0]  (!%p2372_p11), %s3443_s1, 1024, %s2365_s25, [#allocation6], %s2288_s12, %s2288_s12, %s2289_s13  }
  0x29   : > { %p26_p1 = scmp.eq.s32.totalorder %s25_s29, 0  ;;  %p35_p2 = scmp.ne.s32.totalorder %s2281_s17, %s2277_s16 }
  0x2a   : > { %p36_p4 = scmp.eq.s32.totalorder %s2285_s18, 0  ;;  %p2065_p6 = scmp.lt.s32.totalorder %s2285_s18, 2 }
  0x2b   : > { %s2411_s24 = scalar_select %p26_p1, %s2281_s17, %s28_s28  }
  0x2c   : > { %p37_p8 = por %p36_p4, %p35_p2  ;;  %p3462_p10 = scmp.eq.s32.totalorder %s2342_s19, 1 }
  0x2d   : > { %s173_s26 = sand.u32 1, %s2281_s17   ;;  %s1887_s5 = sshll.u32 %s2285_s18, 11 }
  0x2e   : > { %p2415_p12 = por %p3462_p10, %p35_p2  ;;  %s1855_s6 = sshll.u32 %s173_s26, 7 }
  0x2f   : > { %s2424_s9 = scalar_lea.hbm %s3442_s0, %s1887_s5  ;;  %s177_s25 = scalar_lea.vmem [#allocation2], %s1855_s6 }
  0x30   : > { %s185_s28 = sshll.u32 %s177_s25, 4  ;;  %p2426_p11 = pnand %p2065_p6, %p37_p8  ;;  %s2430_s28 = int_to_ptr.vmem [resolvable:$true] %s185_s28 }
  0x31   : > { %s2432_s10 = scalar_lea.sflag [#allocation3], %s173_s26  ;;  %s2185_s11 = scalar_lea.hbm %s2424_s9, 2048 }
  0x32   : > { %p2186_p13 = scmp.ne.s32.totalorder %s2424_s9, %s2185_s11  ;;  %p2187_p0 = pneg %p2426_p11 }
  0x33   : > { %s2190_s5 = scalar_lea.hbm %s3442_s0, 4096  ;;  %p2191_p7 = scmp.lt.u32.totalorder %s2424_s9, %s3442_s0 }
  0x34   : > { %p2188_p3 = pnand %p2187_p0, %p2186_p13  ;;  %p2192_p9 = scmp.lt.u32.totalorder %s2190_s5, %s2185_s11 }
  0x35   : > { %p2194_p2 = scmp.lt.u32.totalorder %s2185_s11, %s2424_s9 }
  0x36   : > { %p2189_p5 = pneg %p2188_p3  ;;  %p2193_p1 = por %p2192_p9, %p2191_p7 }
  0x38   : > { %p2195_p4 = por %p2194_p2, %p2193_p1 }
  0x3a   : > { %p2196_p6 = pnand %p2195_p4, %p2189_p5 }
  0x3c   : > { %2199 = shalt.err (!%p2196_p6)
}
  0x3d   : > { %s2200_s26 = scalar_lea.vmem %s2430_s28, 2048  ;;  %s2290_s8 = smov [#allocation2]  }
  0x3e   : > { %p2201_p8 = scmp.ne.s32.totalorder %s2430_s28, %s2200_s26  ;;  %s2205_s25 = sshll.u32 %s2290_s8, 4  ;;  %s2206_s25 = int_to_ptr.vmem [resolvable:$false] %s2205_s25 }
  0x3f   : > { %s2207_s14 = scalar_lea.vmem %s2206_s25, 4096  ;;  %p2208_p3 = scmp.lt.s32.totalorder %s2430_s28, %s2206_s25 }
  0x40   : > { %p2203_p10 = pnand %p2201_p8, %p2187_p0  ;;  %p2209_p7 = scmp.lt.s32.totalorder %s2207_s14, %s2200_s26 }
  0x42   : > { %p2204_p13 = pneg %p2203_p10  ;;  %p2210_p9 = por %p2209_p7, %p2208_p3 }
  0x44   : > { %p2211_p1 = pnand %p2210_p9, %p2204_p13 }
  0x46   : > { %2214 = shalt.err (!%p2211_p1)
}
  0x47   : > { %2059 = dma.hbm_to_vmem [thread:$0]  (!%p2426_p11), %s2424_s9, 2048, %s2430_s28, %s2432_s10, %s2288_s12, %s2288_s12, %s2289_s13  }
  0x48   : > { %p3465_p0 = scmp.ne.s32.totalorder %s3460_s23, 0 }
  0x49   : > { %s2466_s11 = sand.u32 (!%p3465_p0), 1, %s2277_s16   ;;  %p3466_p5 = scmp.ne.s32.totalorder (!%p3465_p0), %s3458_s21, 0 }
  0x4a   : > { %197 = sbr.rel (%p3465_p0) target bundleno = 1421 (0x58d), region = 36  ;;  %s1860_s20 = sshll.u32 (!%p3465_p0), %s2466_s11, 7 }
  0x4b   : > { %s200_s5 = scalar_lea.sflag (!%p3465_p0), [#allocation3], %s2466_s11  ;;  %s2470_s6 = scalar_lea.vmem (!%p3465_p0), [#allocation2], %s1860_s20 }
  0x51   : > { %2260 = dma.done.wait (%p3466_p5), %s200_s5, 2048  }
  0x52   : > { %2262 = vsyncadd (%p3466_p5), %s200_s5, 4294965248  ;;  %p3467_p11 = scmp.eq.s32.totalorder %s2342_s19, 0 }
  0x54   : > { %2264 = dma.done.wait (%p3467_p11), [#allocation6], 1024   ;;  %p3468_p2 = pmov %p3467_p11 }
  0x55   : > { %v249_v0 = vld [vmem:[#allocation5] sm:$0xff]  ;;  %v250_v1 = vld [vmem:[#allocation5 + $0x8] sm:$0xff]  ;;  %v251_v2 = vld [vmem:[#allocation5 + $0x10] sm:$0xff]  ;;  %vm3454_vm0 = vcmask 523264   ;;  %vm556_vm1 = vcmask 130112   ;;  %vm621_vm2 = vcmask 1041409  }
  0x56   : > { %2266 = vsyncadd (%p3468_p2), [#allocation6], 4294966272  ;;  %v2004_v3 = vpack.c.bf16 %v250_v1, %v249_v0  ;;  %v252_v4 = vld [vmem:[#allocation5 + $0x18] sm:$0xff]  ;;  %v253_v6 = vld [vmem:[#allocation5 + $0x20] sm:$0xff]  ;;  %vm623_vm3 = vcmask 1042434   ;;  %vm625_vm4 = vcmask 1043459  }
  0x57   : > { %v2008_v5 = vpack.c.bf16 %v252_v4, %v251_v2  ;;  %v254_v7 = vld [vmem:[#allocation5 + $0x28] sm:$0xff]  ;;  %v2481_v8 = vld [vmem:[%s2470_s6] sm:$0xff]  ;;  %v255_v10 = vld [vmem:[#allocation5 + $0x30] sm:$0xff]  ;;  %vm3457_vm5 = vcmask 1044484   ;;  %vm3456_vm6 = vcmask 1045509   ;;  %vm631_vm7 = vcmask 1046534  }
  0x58   : > { %2005 = vmatprep.subr.bf16.mxu0 %v2004_v3  ;;  %1945 = vmatprep.mubr.msk.f32.mxu0 %vm3454_vm0, %v2481_v8  ;;  %v2012_v9 = vpack.c.bf16 %v254_v7, %v253_v6  ;;  %v256_v11 = vld [vmem:[#allocation5 + $0x38] sm:$0xff]  ;;  %v2486_v13 = vld [vmem:[%s2470_s6 + $0x8] sm:$0xff]  ;;  %v2489_v14 = vld [vmem:[%s2470_s6 + $0x10] sm:$0xff]  ;;  %vm633_vm8 = vcmask 1047559   ;;  %vm636_vm9 = vcmask 130048   ;;  %vm2293_vm10 = vmmov 0  }
  0x59   : > { %2007 = vmatpush3.bf16.msra.mxu0 %v2004_v3  ;;  %v2016_v12 = vpack.c.bf16 %v256_v11, %v255_v10  ;;  %v2496_v15 = vld [vmem:[%s2470_s6 + $0x18] sm:$0xff]  ;;  %v2499_v16 = vld [vmem:[%s2470_s6 + $0x20] sm:$0xff]  ;;  %v2506_v17 = vld [vmem:[%s2470_s6 + $0x28] sm:$0xff]  ;;  %vm1098_vm11 = vcmask 261312   ;;  %vm1181_vm12 = vcmask 392512   ;;  %vm1264_vm13 = vcmask 523712  }
  0x5a   : > { %2009 = vmatprep.subr.bf16.mxu0 %v2008_v5  ;;  %v2509_v18 = vld [vmem:[%s2470_s6 + $0x30] sm:$0xff]  ;;  %v2516_v19 = vld [vmem:[%s2470_s6 + $0x38] sm:$0xff]  ;;  %v2519_v20 = vld [vmem:[%s2470_s6 + $0x40] sm:$0xff]  ;;  %vm1347_vm14 = vcmask 654912   ;;  %vm1430_vm15 = vcmask 786112   ;;  %s1862_s9 = sshll.u32 %s2466_s11, 3 }
  0x5b   : > { %v2526_v21 = vld [vmem:[%s2470_s6 + $0x48] sm:$0xff]  ;;  %v2529_v22 = vld [vmem:[%s2470_s6 + $0x50] sm:$0xff]  ;;  %v2536_v23 = vld [vmem:[%s2470_s6 + $0x58] sm:$0xff]  ;;  %s1883_s28 = sshll.u32 %s2342_s19, 7  ;;  %s231_s29 = scalar_lea.vmem [#allocation7], %s1862_s9 }
  0x5c   : > { %v2539_v24 = vld [vmem:[%s2470_s6 + $0x60] sm:$0xff]  ;;  %v2546_v25 = vld [vmem:[%s2470_s6 + $0x68] sm:$0xff]  ;;  %v2549_v26 = vld [vmem:[%s2470_s6 + $0x70] sm:$0xff]  ;;  %s1771_s10 = sshll.u32 %s231_s29, 4  ;;  %s3397_s8 = scalar_lea.hbm %s3446_s4, %s1883_s28  ;;  %s3399_s10 = int_to_ptr.vmem [resolvable:$true] %s1771_s10 }
  0x5d   : > { %2011 = vmatpush3.bf16.msra.mxu0 %v2008_v5  ;;  %v2556_v27 = vld [vmem:[%s2470_s6 + $0x78] sm:$0xff]  ;;  %v2563_v28 = vld [vmem:[%s3444_s2] ss:$0 sm:$0xff]  ;;  %s1758_s25 = scalar_lea.sflag [#allocation4], %s2466_s11  ;;  %s2215_s14 = scalar_lea.vmem %s3399_s10, 128 }
  0x5e   : > { %2013 = vmatprep.subr.bf16.mxu0 %v2012_v9  ;;  %v2570_v33 = vld [vmem:[%s3445_s3] ss:$0 sm:$0xff]  ;;  %p2216_p4 = scmp.ne.s32.totalorder %s3399_s10, %s2215_s14  ;;  %s2295_s19 = smov [#allocation7]  }
  0x5f   : > { %s2219_s20 = sshll.u32 %s2295_s19, 4  ;;  %s2220_s20 = int_to_ptr.vmem [resolvable:$false] %s2219_s20 }
  0x60   : > { %p2217_p6 = pnand %p2216_p4, %p2415_p12  ;;  %s2221_s5 = scalar_lea.vmem %s2220_s20, 256 }
  0x61   : > { %2015 = vmatpush3.bf16.msra.mxu0 %v2012_v9  ;;  %p2222_p10 = scmp.lt.s32.totalorder %s3399_s10, %s2220_s20  ;;  %p2223_p13 = scmp.lt.s32.totalorder %s2221_s5, %s2215_s14 }
  0x62   : > { %2017 = vmatprep.subr.bf16.mxu0 %v2016_v12  ;;  %p2218_p8 = pneg %p2217_p6 }
  0x63   : > { %p2224_p3 = por %p2223_p13, %p2222_p10 }
  0x65   : > { %2019 = vmatpush3.bf16.msra.mxu0 %v2016_v12  ;;  %p2225_p7 = pnand %p2224_p3, %p2218_p8 }
  0x68   : > { %1946 = vmatmul.mubr.msk.f32.vlgmr.msra.gmra.mrb[0].mxu0 %vm3454_vm0, %v2486_v13 }
  0x69   : > { %1948 = vmatprep.mubr.msk.f32.mxu0 %vm3454_vm0, %v2489_v14 }
  0x6c   : > { %1949 = vmatmul.mubr.msk.f32.gmra.mrb[2].mxu0 %vm3454_vm0, %v2496_v15 }
  0x6d   : > { %1951 = vmatprep.mubr.msk.f32.mxu0 %vm3454_vm0, %v2499_v16 }
  0x70   : > { %1952 = vmatmul.mubr.msk.f32.gmra.mrb[4].mxu0 %vm3454_vm0, %v2506_v17 }
  0x71   : > { %1954 = vmatprep.mubr.msk.f32.mxu0 %vm3454_vm0, %v2509_v18 }
  0x74   : > { %1955 = vmatmul.mubr.msk.f32.gmra.mrb[6].mxu0 %vm3454_vm0, %v2516_v19 }
  0x75   : > { %1957 = vmatprep.mubr.msk.f32.mxu0 %vm3454_vm0, %v2519_v20 }
  0x78   : > { %1958 = vmatmul.mubr.msk.f32.gmra.mrb[8].mxu0 %vm3454_vm0, %v2526_v21 }
  0x79   : > { %1960 = vmatprep.mubr.msk.f32.mxu0 %vm3454_vm0, %v2529_v22 }
  0x7c   : > { %1961 = vmatmul.mubr.msk.f32.gmra.mrb[10].mxu0 %vm3454_vm0, %v2536_v23 }
  0x7d   : > { %1963 = vmatprep.mubr.msk.f32.mxu0 %vm3454_vm0, %v2539_v24 }
  0x80   : > { %1964 = vmatmul.mubr.msk.f32.gmra.mrb[12].mxu0 %vm3454_vm0, %v2546_v25 }
  0x81   : > { %1966 = vmatprep.mubr.msk.f32.mxu0 %vm3454_vm0, %v2549_v26 }
  0x84   : > { %1967 = vmatmul.mubr.msk.f32.gmra.mrb[14].mxu0 %vm3454_vm0, %v2556_v27  ;;  %vm1596_vm0 = vcmask 1048512  }
 0x13b   : > { %v1947_v29 = vpop.f32.mrb[0].mxu0 }
 0x13c   : > { %v385_v30 = vadd.f32 %v1947_v29, %v2563_v28  ;;  %v379_v31 = vpop.f32.mrb[1].mxu0 }
 0x13d   : > { %v380_v32 = vadd.f32 %v2563_v28, %v379_v31 }
 0x13e   : > { %v459_v34 = vmax.f32 %v385_v30, 0.0 }
 0x13f   : > { %v1950_v35 = vpop.f32.mrb[2].mxu0  ;;  %v458_v36 = vmax.f32 %v380_v32, 0.0 }
 0x140   : > { %v395_v37 = vadd.f32 %v1950_v35, %v2563_v28  ;;  %v389_v38 = vpop.f32.mrb[3].mxu0  ;;  %v482_v39 = vmul.f32 %v2570_v33, %v459_v34 }
 0x141   : > { %v390_v40 = vadd.f32 %v2563_v28, %v389_v38  ;;  %v481_v47 = vmul.f32 %v2570_v33, %v458_v36 }
 0x142   : > { %v461_v41 = vmax.f32 %v395_v37, 0.0  ;;  %499 = vadd.xlane.f32.xlu0 %v482_v39 }
 0x143   : > { %v1953_v42 = vpop.f32.mrb[4].mxu0  ;;  %v460_v43 = vmax.f32 %v390_v40, 0.0 }
 0x144   : > { %v405_v44 = vadd.f32 %v1953_v42, %v2563_v28  ;;  %v484_v45 = vmul.f32 %v2570_v33, %v461_v41  ;;  %v399_v46 = vpop.f32.mrb[5].mxu0 }
 0x145   : > { %v400_v48 = vadd.f32 %v2563_v28, %v399_v46  ;;  %v483_v54 = vmul.f32 %v2570_v33, %v460_v43 }
 0x146   : > { %v463_v49 = vmax.f32 %v405_v44, 0.0  ;;  %503 = vadd.xlane.f32.xlu1 %v484_v45  ;;  %497 = vadd.xlane.f32.xlu0 %v481_v47 }
 0x147   : > { %v462_v50 = vmax.f32 %v400_v48, 0.0  ;;  %v1956_v51 = vpop.f32.mrb[6].mxu0 }
 0x148   : > { %v415_v52 = vadd.f32 %v1956_v51, %v2563_v28  ;;  %v409_v53 = vpop.f32.mrb[7].mxu0  ;;  %v486_v58 = vmul.f32 %v2570_v33, %v463_v49 }
 0x149   : > { %v410_v55 = vadd.f32 %v2563_v28, %v409_v53  ;;  %v485_v56 = vmul.f32 %v2570_v33, %v462_v50 }
 0x14a   : > { %v465_v57 = vmax.f32 %v415_v52, 0.0  ;;  %501 = vadd.xlane.f32.xlu1 %v483_v54  ;;  %v545_v52 = vlaneseq }
 0x14b   : > { %v464_v59 = vmax.f32 %v410_v55, 0.0  ;;  %v1959_v60 = vpop.f32.mrb[8].mxu0  ;;  %505 = vadd.xlane.f32.xlu0 %v485_v56 }
 0x14c   : > { %v425_v61 = vadd.f32 %v1959_v60, %v2563_v28  ;;  %v419_v62 = vpop.f32.mrb[9].mxu0  ;;  %v488_v2 = vmul.f32 %v2570_v33, %v465_v57  ;;  %v2616_v55 = vand.u32 127, %v545_v52  ;;  %v2622_v57 = vshrl.u32 %v545_v52, 7 }
 0x14d   : > { %v420_v63 = vadd.f32 %v2563_v28, %v419_v62  ;;  %v487_v0 = vmul.f32 %v2570_v33, %v464_v59 }
 0x14e   : > { %v467_v1 = vmax.f32 %v425_v61, 0.0  ;;  %507 = vadd.xlane.f32.xlu1 %v486_v58  ;;  %v551_v58 = vadd.s32 4294967288, %v2616_v55  ;;  %v2629_v60 = vsub.s32 %v2616_v55, %v2622_v57 }
 0x14f   : > { %v466_v3 = vmax.f32 %v420_v63, 0.0  ;;  %v1962_v4 = vpop.f32.mrb[10].mxu0  ;;  %509 = vadd.xlane.f32.xlu0 %v487_v0 }
 0x150   : > { %v435_v5 = vadd.f32 %v1962_v4, %v2563_v28  ;;  %v429_v6 = vpop.f32.mrb[11].mxu0  ;;  %v490_v11 = vmul.f32 %v2570_v33, %v467_v1  ;;  %v2634_v62 = vsub.s32 %v551_v58, %v2622_v57 }
 0x151   : > { %v430_v7 = vadd.f32 %v2563_v28, %v429_v6  ;;  %v489_v9 = vmul.f32 %v2570_v33, %v466_v3 }
 0x152   : > { %v469_v10 = vmax.f32 %v435_v5, 0.0  ;;  %511 = vadd.xlane.f32.xlu1 %v488_v2 }
 0x153   : > { %v468_v12 = vmax.f32 %v430_v7, 0.0  ;;  %v1965_v29 = vpop.f32.mrb[12].mxu0  ;;  %513 = vadd.xlane.f32.xlu0 %v489_v9 }
 0x154   : > { %v445_v30 = vadd.f32 %v1965_v29, %v2563_v28  ;;  %v439_v31 = vpop.f32.mrb[13].mxu0  ;;  %v492_v36 = vmul.f32 %v2570_v33, %v469_v10 }
 0x155   : > { %v440_v32 = vadd.f32 %v2563_v28, %v439_v31  ;;  %v491_v34 = vmul.f32 %v2570_v33, %v468_v12 }
 0x156   : > { %v471_v35 = vmax.f32 %v445_v30, 0.0  ;;  %515 = vadd.xlane.f32.xlu1 %v490_v11 }
 0x157   : > { %v470_v37 = vmax.f32 %v440_v32, 0.0  ;;  %v1968_v38 = vpop.f32.mrb[14].mxu0  ;;  %517 = vadd.xlane.f32.xlu0 %v491_v34 }
 0x158   : > { %v455_v39 = vadd.f32 %v1968_v38, %v2563_v28  ;;  %v449_v40 = vpop.f32.mrb[15].mxu0  ;;  %v494_v44 = vmul.f32 %v2570_v33, %v471_v35 }
 0x159   : > { %v450_v41 = vadd.f32 %v2563_v28, %v449_v40  ;;  %v493_v42 = vmul.f32 %v2570_v33, %v470_v37 }
 0x15a   : > { %v473_v43 = vmax.f32 %v455_v39, 0.0  ;;  %519 = vadd.xlane.f32.xlu1 %v492_v36 }
 0x15b   : > { %v472_v45 = vmax.f32 %v450_v41, 0.0  ;;  %521 = vadd.xlane.f32.xlu0 %v493_v42 }
 0x15c   : > { %v496_v47 = vmul.f32 %v2570_v33, %v473_v43 }
 0x15d   : > { %v495_v46 = vmul.f32 %v2570_v33, %v472_v45 }
 0x15e   : > { %523 = vadd.xlane.f32.xlu1 %v494_v44 }
 0x15f   : > { %525 = vadd.xlane.f32.xlu0 %v495_v46 }
 0x162   : > { %527 = vadd.xlane.f32.xlu1 %v496_v47 }
 0x1cf   : > { %v2602_v48 = vpop.xlane.xlu0 %499 }
 0x1d0   : > { %v555_v11 = vrot.slane %v2602_v48, %v2634_v62 }
 0x1d3   : > { %v2604_v49 = vpop.xlane.xlu1 %503  ;;  %v2606_v28 = vpop.xlane.xlu0 %497 }
 0x1d4   : > { %v565_v3 = vrot.slane %v2604_v49, %v2634_v62  ;;  %v550_v4 = vrot.slane %v2606_v28, %v2629_v60 }
 0x1d6   : > { %v557_v35 = vsel %vm556_vm1, %v555_v11, %v550_v4  ;;  %v2291_v4 = vmov 0  }
 0x1d7   : > { %v2608_v50 = vpop.xlane.xlu1 %501  ;;  %2108 = vset.pattern.permute.xlu0 %v2291_v4  ;;  %2107 = vset.pattern.permute.xlu1 %v2291_v4 }
 0x1d8   : > { %v2610_v51 = vpop.xlane.xlu0 %505  ;;  %v561_v63 = vrot.slane %v2608_v50, %v2629_v60 }
 0x1d9   : > { %v570_v0 = vrot.slane %v2610_v51, %v2629_v60 }
 0x1da   : > { %v566_v12 = vsel %vm556_vm1, %v565_v3, %v561_v63 }
 0x1db   : > { %v2612_v53 = vpop.xlane.xlu1 %507  ;;  %v622_v39 = vsel %vm621_vm2, %v566_v12, %v557_v35  ;;  %v3451_v12 = vsub.s32 5, %v2622_v57  ;;  %v3450_v35 = vsub.s32 6, %v2622_v57 }
 0x1dc   : > { %v2614_v54 = vpop.xlane.xlu0 %509  ;;  %v574_v1 = vrot.slane %v2612_v53, %v2634_v62 }
 0x1dd   : > { %v579_v5 = vrot.slane %v2614_v54, %v2629_v60 }
 0x1de   : > { %v575_v31 = vsel %vm556_vm1, %v574_v1, %v570_v0 }
 0x1df   : > { %v2618_v33 = vpop.xlane.xlu1 %511  ;;  %v624_v41 = vsel %vm623_vm3, %v575_v31, %v622_v39  ;;  %v3453_v31 = vsub.s32 2, %v2622_v57 }
 0x1e0   : > { %v2620_v56 = vpop.xlane.xlu0 %513  ;;  %v583_v6 = vrot.slane %v2618_v33, %v2634_v62 }
 0x1e1   : > { %v588_v9 = vrot.slane %v2620_v56, %v2629_v60 }
 0x1e2   : > { %v584_v36 = vsel %vm556_vm1, %v583_v6, %v579_v5  ;;  %v643_v5 = vsub.s32 0, %v2622_v57  ;;  %v647_v6 = vsub.s32 1, %v2622_v57 }
 0x1e3   : > { %v2625_v59 = vpop.xlane.xlu1 %515  ;;  %v626_v44 = vsel %vm625_vm4, %v584_v36, %v624_v41 }
 0x1e4   : > { %v2631_v61 = vpop.xlane.xlu0 %517  ;;  %v592_v10 = vrot.slane %v2625_v59, %v2634_v62 }
 0x1e5   : > { %v597_v29 = vrot.slane %v2631_v61, %v2629_v60 }
 0x1e6   : > { %v593_v40 = vsel %vm556_vm1, %v592_v10, %v588_v9 }
 0x1e7   : > { %v2642_v2 = vpop.xlane.xlu1 %519  ;;  %v628_v52 = vsel %vm3457_vm5, %v593_v40, %v626_v44 }
 0x1e8   : > { %v2652_v7 = vpop.xlane.xlu0 %521  ;;  %v601_v30 = vrot.slane %v2642_v2, %v2634_v62 }
 0x1e9   : > { %v606_v32 = vrot.slane %v2652_v7, %v2629_v60 }
 0x1ea   : > { %v602_v42 = vsel %vm556_vm1, %v601_v30, %v597_v29 }
 0x1eb   : > { %v2668_v34 = vpop.xlane.xlu1 %523  ;;  %v630_v58 = vsel %vm3456_vm6, %v602_v42, %v628_v52 }
 0x1ec   : > { %v610_v37 = vrot.slane %v2668_v34, %v2634_v62  ;;  %v2674_v38 = vpop.xlane.xlu0 %525 }
 0x1ed   : > { %v615_v43 = vrot.slane %v2674_v38, %v2629_v60 }
 0x1ee   : > { %v611_v46 = vsel %vm556_vm1, %v610_v37, %v606_v32 }
 0x1ef   : > { %v2683_v45 = vpop.xlane.xlu1 %527  ;;  %v632_v0 = vsel %vm631_vm7, %v611_v46, %v630_v58 }
 0x1f0   : > { %v619_v47 = vrot.slane %v2683_v45, %v2634_v62 }
 0x1f2   : > { %v620_v63 = vsel %vm556_vm1, %v619_v47, %v615_v43  ;;  %v3452_v43 = vsub.s32 3, %v2622_v57 }
 0x1f3   : > { %v634_v1 = vsel %vm633_vm8, %v620_v63, %v632_v0 }
 0x1f4   : > { %v637_v3 = vsel %vm636_vm9, %v634_v1, -inf }
 0x1f5   : > { %638 = vmax.xlane.f32.xlu0 %v637_v3 }
 0x282   : > { %v639_v9 = vpop.xlane.xlu0 %638 }
 0x283   : > { %v644_v10 = vrot.slane %v639_v9, %v643_v5  ;;  %v648_v11 = vrot.slane %v639_v9, %v647_v6  ;;  %v2708_v36 = vrot.slane %v639_v9, %v3451_v12  ;;  %v652_v40 = vrot.slane %v639_v9, %v3453_v31 }
 0x284   : > { %v656_v58 = vrot.slane %v639_v9, %v3452_v43 }
 0x285   : > { %v681_v29 = vsub.f32 %v2606_v28, %v644_v10  ;;  %v682_v30 = vsub.f32 %v2602_v48, %v644_v10  ;;  %v683_v32 = vsub.f32 %v2608_v50, %v648_v11  ;;  %v684_v41 = vsub.f32 %v2604_v49, %v648_v11 }
 0x286   : > { %v671_v48 = vsub.s32 7, %v2622_v57  ;;  %v2716_v50 = vrot.slane %v639_v9, %v3450_v35  ;;  %v691_v42 = vsub.f32 %v2631_v61, %v2708_v36  ;;  %v685_v44 = vsub.f32 %v2610_v51, %v652_v40 }
 0x287   : > { %v697_v37 = vmul.f32 1.442695, %v681_v29  ;;  %v699_v39 = vmul.f32 1.442695, %v682_v30  ;;  %v701_v28 = vmul.f32 1.442695, %v683_v32  ;;  %v686_v63 = vsub.f32 %v2612_v53, %v652_v40 }
 0x288   : > { %v703_v46 = vmul.f32 1.442695, %v684_v41  ;;  %v672_v49 = vrot.slane %v639_v9, %v671_v48  ;;  %v693_v47 = vsub.f32 %v2652_v7, %v2716_v50  ;;  %v717_v52 = vmul.f32 1.442695, %v691_v42 }
 0x289   : > { %2109 = vpow2.f32 %v697_v37  ;;  %v705_v61 = vmul.f32 1.442695, %v685_v44  ;;  %v659_v7 = vsub.s32 4, %v2622_v57  ;;  %v687_v4 = vsub.f32 %v2614_v54, %v656_v58 }
 0x28a   : > { %2111 = vpow2.f32 %v699_v39  ;;  %v695_v51 = vsub.f32 %v2674_v38, %v672_v49  ;;  %v721_v1 = vmul.f32 1.442695, %v693_v47  ;;  %v707_v10 = vmul.f32 1.442695, %v686_v63 }
 0x28b   : > { %2113 = vpow2.f32 %v701_v28  ;;  %v660_v38 = vrot.slane %v639_v9, %v659_v7  ;;  %v688_v29 = vsub.f32 %v2618_v33, %v656_v58  ;;  %v709_v30 = vmul.f32 1.442695, %v687_v4 }
 0x28c   : > { %2115 = vpow2.f32 %v703_v46  ;;  %v725_v11 = vmul.f32 1.442695, %v695_v51  ;;  %v692_v42 = vsub.f32 %v2642_v2, %v2708_v36  ;;  %v696_v58 = vsub.f32 %v2683_v45, %v672_v49 }
 0x28d   : > { %2117 = vpow2.f32 %v717_v52  ;;  %v689_v37 = vsub.f32 %v2620_v56, %v660_v38  ;;  %v711_v39 = vmul.f32 1.442695, %v688_v29  ;;  %v690_v9 = vsub.f32 %v2625_v59, %v660_v38 }
 0x28e   : > { %2119 = vpow2.f32 %v705_v61  ;;  %v694_v59 = vsub.f32 %v2668_v34, %v2716_v50  ;;  %v719_v47 = vmul.f32 1.442695, %v692_v42  ;;  %v727_v63 = vmul.f32 1.442695, %v696_v58 }
 0x28f   : > { %2121 = vpow2.f32 %v721_v1  ;;  %v713_v41 = vmul.f32 1.442695, %v689_v37  ;;  %v715_v44 = vmul.f32 1.442695, %v690_v9 }
 0x290   : > { %2123 = vpow2.f32 %v707_v10  ;;  %v723_v2 = vmul.f32 1.442695, %v694_v59 }
 0x291   : > { %2125 = vpow2.f32 %v725_v11 }
 0x292   : > { %2127 = vpow2.f32 %v709_v30 }
 0x293   : > { %v2729_v0 = vpop.eup %2109  ;;  %2129 = vpow2.f32 %v711_v39 }
 0x294   : > { %v2732_v3 = vpop.eup %2111  ;;  %746 = vperm.xlu1 %2107, %v2729_v0   ;;  %2131 = vpow2.f32 %v713_v41 }
 0x295   : > { %749 = vperm.xlu0 %2108, %v2732_v3   ;;  %v2738_v53 = vpop.eup %2113  ;;  %2133 = vpow2.f32 %v715_v44 }
 0x296   : > { %v2744_v32 = vpop.eup %2115  ;;  %2135 = vpow2.f32 %v719_v47 }
 0x297   : > { %v2747_v54 = vpop.eup %2117  ;;  %2137 = vpow2.f32 %v723_v2 }
 0x298   : > { %752 = vperm.xlu1 %2107, %v2738_v53   ;;  %v2751_v40 = vpop.eup %2119  ;;  %2139 = vpow2.f32 %v727_v63 }
 0x299   : > { %776 = vperm.xlu0 %2108, %v2747_v54   ;;  %v2754_v33 = vpop.eup %2121 }
 0x29a   : > { %v2758_v28 = vpop.eup %2123 }
 0x29b   : > { %v2761_v56 = vpop.eup %2125 }
 0x29c   : > { %755 = vperm.xlu1 %2107, %v2744_v32   ;;  %v2766_v46 = vpop.eup %2127 }
 0x29d   : > { %782 = vperm.xlu0 %2108, %v2754_v33   ;;  %v2771_v52 = vpop.eup %2129 }
 0x29e   : > { %v2775_v36 = vpop.eup %2131 }
 0x29f   : > { %v2778_v61 = vpop.eup %2133 }
 0x2a0   : > { %758 = vperm.xlu1 %2107, %v2751_v40   ;;  %v2781_v34 = vpop.eup %2135 }
 0x2a1   : > { %788 = vperm.xlu0 %2108, %v2761_v56   ;;  %v2784_v50 = vpop.eup %2137 }
 0x2a2   : > { %v2787_v45 = vpop.eup %2139 }
 0x2a4   : > { %761 = vperm.xlu1 %2107, %v2758_v28  }
 0x2a8   : > { %764 = vperm.xlu1 %2107, %v2766_v46  }
 0x2ac   : > { %767 = vperm.xlu1 %2107, %v2771_v52  }
 0x2b0   : > { %770 = vperm.xlu1 %2107, %v2775_v36  }
 0x2b4   : > { %773 = vperm.xlu1 %2107, %v2778_v61  }
 0x2b8   : > { %779 = vperm.xlu1 %2107, %v2781_v34  }
 0x2bc   : > { %785 = vperm.xlu1 %2107, %v2784_v50  }
 0x2c0   : > { %791 = vperm.xlu1 %2107, %v2787_v45  }
 0x313   : > { %v747_v49 = vpop.permute.xlu1 %746 }
 0x314   : > { %v750_v38 = vpop.permute.xlu0 %749  ;;  %v796_v47 = vrot.slane %v747_v49, %v2629_v60 }
 0x315   : > { %v800_v59 = vrot.slane %v750_v38, %v2634_v62 }
 0x317   : > { %v753_v51 = vpop.permute.xlu1 %752  ;;  %v801_v49 = vsel %vm556_vm1, %v800_v59, %v796_v47 }
 0x318   : > { %v777_v37 = vpop.permute.xlu0 %776  ;;  %v805_v58 = vrot.slane %v753_v51, %v2629_v60 }
 0x319   : > { %v841_v51 = vrot.slane %v777_v37, %v2629_v60 }
 0x31b   : > { %v756_v1 = vpop.permute.xlu1 %755 }
 0x31c   : > { %v809_v9 = vrot.slane %v756_v1, %v2634_v62  ;;  %v783_v41 = vpop.permute.xlu0 %782 }
 0x31e   : > { %v810_v12 = vsel %vm556_vm1, %v809_v9, %v805_v58 }
 0x31f   : > { %v759_v4 = vpop.permute.xlu1 %758  ;;  %v865_v9 = vsel %vm621_vm2, %v810_v12, %v801_v49 }
 0x320   : > { %v814_v63 = vrot.slane %v759_v4, %v2629_v60 }
 0x323   : > { %v762_v10 = vpop.permute.xlu1 %761 }
 0x324   : > { %v818_v42 = vrot.slane %v762_v10, %v2634_v62 }
 0x326   : > { %v819_v10 = vsel %vm556_vm1, %v818_v42, %v814_v63 }
 0x327   : > { %v765_v11 = vpop.permute.xlu1 %764  ;;  %v866_v42 = vsel %vm623_vm3, %v819_v10, %v865_v9  ;;  %v3469_v9 = vsub.s32 2, %v2622_v57 }
 0x328   : > { %v823_v1 = vrot.slane %v765_v11, %v2629_v60  ;;  %v789_v11 = vpop.permute.xlu0 %788 }
 0x329   : > { %v859_v47 = vrot.slane %v789_v11, %v2629_v60 }
 0x32b   : > { %v768_v29 = vpop.permute.xlu1 %767 }
 0x32c   : > { %v827_v2 = vrot.slane %v768_v29, %v2634_v62 }
 0x32e   : > { %v828_v29 = vsel %vm556_vm1, %v827_v2, %v823_v1 }
 0x32f   : > { %v771_v30 = vpop.permute.xlu1 %770  ;;  %v867_v58 = vsel %vm625_vm4, %v828_v29, %v866_v42 }
 0x330   : > { %v832_v38 = vrot.slane %v771_v30, %v2629_v60 }
 0x333   : > { %v774_v39 = vpop.permute.xlu1 %773 }
 0x334   : > { %v836_v35 = vrot.slane %v774_v39, %v2634_v62  ;;  %v850_v39 = vrot.slane %v783_v41, %v2629_v60 }
 0x337   : > { %v780_v44 = vpop.permute.xlu1 %779 }
 0x338   : > { %v845_v43 = vrot.slane %v780_v44, %v2634_v62  ;;  %v837_v44 = vsel %vm556_vm1, %v836_v35, %v832_v38 }
 0x33a   : > { %v846_v30 = vsel %vm556_vm1, %v845_v43, %v841_v51 }
 0x33b   : > { %v786_v31 = vpop.permute.xlu1 %785 }
 0x33c   : > { %v854_v4 = vrot.slane %v786_v31, %v2634_v62  ;;  %v868_v31 = vsel %vm3457_vm5, %v837_v44, %v867_v58 }
 0x33d   : > { %v869_v12 = vsel %vm3456_vm6, %v846_v30, %v868_v31 }
 0x33e   : > { %v855_v59 = vsel %vm556_vm1, %v854_v4, %v850_v39 }
 0x33f   : > { %v792_v37 = vpop.permute.xlu1 %791  ;;  %v870_v35 = vsel %vm631_vm7, %v855_v59, %v869_v12 }
 0x340   : > { %v863_v41 = vrot.slane %v792_v37, %v2634_v62 }
 0x342   : > { %v864_v2 = vsel %vm556_vm1, %v863_v41, %v859_v47 }
 0x343   : > { %v871_v63 = vsel %vm633_vm8, %v864_v2, %v870_v35  ;;  %v2292_v2 = vmov 0.0|0.0   ;;  %v2021_v35 = vpack.c.bf16 %v2486_v13, %v2481_v8  ;;  %v2030_v8 = vpack.c.bf16 %v2516_v19, %v2509_v18 }
 0x344   : > { %v873_v43 = vsel %vm636_vm9, %v871_v63, 0.0  ;;  %2020 = vmatprep.subr.bf16.mxu1 %v2292_v2  ;;  %v2294_v18 = vmov 0.0   ;;  %v2042_v19 = vpack.c.bf16 %v2556_v27, %v2549_v26 }
 0x345   : > { %874 = vadd.xlane.f32.xlu0 %v873_v43  ;;  %2022 = vmatpush3.bf16.msra.mxu1 %v2021_v35 }
 0x346   : > { %2023 = vmatprep.subr.bf16.mxu1 %v2292_v2  ;;  %2001 = vmatprep.mubr.msk.f32.mxu1 %vm2293_vm10, %v2294_v18  ;;  %vm1513_vm10 = vcmask 917312  }
 0x3d2   : > { %v875_v1 = vpop.xlane.xlu0 %874 }
 0x3d3   : > { %v896_v10 = vrot.slane %v875_v1, %v659_v7  ;;  %v880_v38 = vrot.slane %v875_v1, %v643_v5  ;;  %v908_v49 = vrot.slane %v875_v1, %v671_v48  ;;  %v884_v51 = vrot.slane %v875_v1, %v647_v6 }
 0x3d4   : > { %v888_v7 = vrot.slane %v875_v1, %v3469_v9  ;;  %v3470_v6 = vsub.s32 3, %v2622_v57 }
 0x3d5   : > { %2141 = vrcp.f32 %v896_v10  ;;  %v1342_v10 = vadd.s32 4294967224, %v2616_v55 }
 0x3d6   : > { %2143 = vrcp.f32 %v880_v38  ;;  %v892_v30 = vrot.slane %v875_v1, %v3470_v6  ;;  %v1425_v38 = vadd.s32 4294967208, %v2616_v55 }
 0x3d7   : > { %2145 = vrcp.f32 %v908_v49 }
 0x3d8   : > { %2147 = vrcp.f32 %v884_v51  ;;  %v1508_v51 = vadd.s32 4294967192, %v2616_v55  ;;  %v2923_v6 = vsub.s32 %v1425_v38, %v2622_v57 }
 0x3d9   : > { %2149 = vrcp.f32 %v888_v7 }
 0x3da   : > { %2151 = vrcp.f32 %v892_v30 }
 0x3df   : > { %v2142_v29 = vpop.eup %2141 }
 0x3e0   : > { %v2144_v4 = vpop.eup %2143  ;;  %v930_v39 = vmul.f32 %v2142_v29, %v2775_v36 }
 0x3e1   : > { %v2146_v11 = vpop.eup %2145  ;;  %v918_v5 = vmul.f32 %v2144_v4, %v2729_v0  ;;  %v919_v44 = vmul.f32 %v2144_v4, %v2732_v3  ;;  %v3455_v4 = vmul.u32 16, %v2622_v57 }
 0x3e2   : > { %985 = vperm.xlu0 %2108, %v930_v39   ;;  %v939_v48 = vmul.f32 %v2146_v11, %v2761_v56  ;;  %v2148_v42 = vpop.eup %2147  ;;  %v3471_v56 = vsub.s32 5, %v2622_v57 }
 0x3e3   : > { %961 = vperm.xlu1 %2107, %v918_v5   ;;  %v921_v36 = vmul.f32 %v2148_v42, %v2738_v53  ;;  %v922_v58 = vmul.f32 %v2148_v42, %v2744_v32  ;;  %v2150_v0 = vpop.eup %2149  ;;  %v3472_v53 = vsub.s32 6, %v2622_v57  ;;  %v2920_v42 = vsub.s32 %v1342_v10, %v2622_v57 }
 0x3e4   : > { %v924_v59 = vmul.f32 %v2150_v0, %v2751_v40  ;;  %v900_v3 = vrot.slane %v875_v1, %v3471_v56  ;;  %v925_v37 = vmul.f32 %v2150_v0, %v2758_v28  ;;  %v2152_v47 = vpop.eup %2151  ;;  %v931_v40 = vmul.f32 %v2142_v29, %v2778_v61 }
 0x3e5   : > { %v927_v31 = vmul.f32 %v2152_v47, %v2766_v46  ;;  %v904_v41 = vrot.slane %v875_v1, %v3472_v53  ;;  %v928_v32 = vmul.f32 %v2152_v47, %v2771_v52  ;;  %v2024_v46 = vpack.c.bf16 %v2496_v15, %v2489_v14 }
 0x3e6   : > { %1003 = vperm.xlu0 %2108, %v939_v48   ;;  %2153 = vrcp.f32 %v900_v3  ;;  %v2033_v14 = vpack.c.bf16 %v2526_v21, %v2519_v20  ;;  %v940_v15 = vmul.f32 %v2146_v11, %v2787_v45  ;;  %v1088_v20 = vadd.s32 4294967280, %v2616_v55 }
 0x3e7   : > { %964 = vperm.xlu1 %2107, %v919_v44   ;;  %2155 = vrcp.f32 %v904_v41  ;;  %2025 = vmatpush3.bf16.msra.mxu1 %v2024_v46  ;;  %v1171_v21 = vadd.s32 4294967264, %v2616_v55  ;;  %v1176_v45 = vadd.s32 4294967256, %v2616_v55  ;;  %v1259_v1 = vadd.s32 4294967240, %v2616_v55 }
 0x3e8   : > { %2026 = vmatprep.subr.bf16.mxu1 %v2292_v2  ;;  %v1591_v29 = vadd.s32 4294967176, %v2616_v55  ;;  %v2935_v0 = vadd.s32 16, %v3455_v4 }
 0x3e9   : > { %v2881_v26 = vsub.s32 %v1171_v21, %v2622_v57  ;;  %v2914_v48 = vsub.s32 %v1176_v45, %v2622_v57  ;;  %v2917_v44 = vsub.s32 %v1259_v1, %v2622_v57 }
 0x3eb   : > { %967 = vperm.xlu1 %2107, %v921_v36   ;;  %v2928_v36 = vsub.s32 %v1508_v51, %v2622_v57 }
 0x3ef   : > { %970 = vperm.xlu1 %2107, %v922_v58   ;;  %v2931_v58 = vsub.s32 %v1591_v29, %v2622_v57 }
 0x3f0   : > { %v2154_v12 = vpop.eup %2153 }
 0x3f1   : > { %v933_v28 = vmul.f32 %v2154_v12, %v2747_v54  ;;  %v934_v52 = vmul.f32 %v2154_v12, %v2781_v34  ;;  %v2156_v63 = vpop.eup %2155  ;;  %v2027_v54 = vpack.c.bf16 %v2506_v17, %v2499_v16  ;;  %v2036_v16 = vpack.c.bf16 %v2536_v23, %v2529_v22 }
 0x3f2   : > { %v936_v61 = vmul.f32 %v2156_v63, %v2754_v33  ;;  %v937_v13 = vmul.f32 %v2156_v63, %v2784_v50  ;;  %v2039_v17 = vpack.c.bf16 %v2546_v25, %v2539_v24  ;;  %v1254_v22 = vadd.s32 4294967248, %v2616_v55 }
 0x3f3   : > { %973 = vperm.xlu1 %2107, %v924_v59   ;;  %2028 = vmatpush3.bf16.msra.mxu1 %v2027_v54  ;;  %v1337_v23 = vadd.s32 4294967232, %v2616_v55  ;;  %v1420_v24 = vadd.s32 4294967216, %v2616_v55  ;;  %v2876_v25 = vsub.s32 %v1088_v20, %v2622_v57  ;;  %v1503_v33 = vadd.s32 4294967200, %v2616_v55 }
 0x3f4   : > { %2029 = vmatprep.subr.bf16.mxu1 %v2292_v2  ;;  %v1586_v34 = vadd.s32 4294967184, %v2616_v55  ;;  %v2884_v27 = vsub.s32 %v1254_v22, %v2622_v57  ;;  %v1093_v50 = vadd.s32 4294967272, %v2616_v55 }
 0x3f5   : > { %v2889_v43 = vsub.s32 %v1337_v23, %v2622_v57  ;;  %v2895_v49 = vsub.s32 %v1420_v24, %v2622_v57  ;;  %v2901_v39 = vsub.s32 %v1503_v33, %v2622_v57 }
 0x3f6   : > { %v2906_v7 = vsub.s32 %v1586_v34, %v2622_v57  ;;  %v2911_v5 = vsub.s32 %v1093_v50, %v2622_v57 }
 0x3f7   : > { %976 = vperm.xlu1 %2107, %v925_v37   ;;  %2031 = vmatpush3.bf16.msra.mxu1 %v2030_v8 }
 0x3f8   : > { %2032 = vmatprep.subr.bf16.mxu1 %v2292_v2 }
 0x3fb   : > { %979 = vperm.xlu1 %2107, %v927_v31   ;;  %2034 = vmatpush3.bf16.msra.mxu1 %v2033_v14 }
 0x3fc   : > { %2035 = vmatprep.subr.bf16.mxu1 %v2292_v2 }
 0x3ff   : > { %982 = vperm.xlu1 %2107, %v928_v32   ;;  %2037 = vmatpush3.bf16.msra.mxu1 %v2036_v16 }
 0x400   : > { %2038 = vmatprep.subr.bf16.mxu1 %v2292_v2 }
 0x403   : > { %988 = vperm.xlu1 %2107, %v931_v40   ;;  %2040 = vmatpush3.bf16.msra.mxu1 %v2039_v17 }
 0x404   : > { %2041 = vmatprep.subr.bf16.mxu1 %v2292_v2 }
 0x407   : > { %991 = vperm.xlu1 %2107, %v933_v28   ;;  %2043 = vmatpush3.bf16.msra.mxu1 %v2042_v19 }
 0x40b   : > { %994 = vperm.xlu1 %2107, %v934_v52  }
 0x40f   : > { %997 = vperm.xlu1 %2107, %v936_v61  }
 0x413   : > { %1000 = vperm.xlu1 %2107, %v937_v13  }
 0x417   : > { %1006 = vperm.xlu1 %2107, %v940_v15  }
 0x461   : > { %v2903_v9 = vpop.permute.xlu0 %985 }
 0x462   : > { %v2908_v11 = vpop.permute.xlu1 %961  ;;  %v1047_v30 = vrot.slane %v2903_v9, %v2629_v60  ;;  %v1130_v59 = vrot.slane %v2903_v9, %v2876_v25  ;;  %v1213_v56 = vrot.slane %v2903_v9, %v2881_v26  ;;  %v1296_v3 = vrot.slane %v2903_v9, %v2884_v27 }
 0x463   : > { %v1379_v37 = vrot.slane %v2903_v9, %v2889_v43  ;;  %v1011_v53 = vrot.slane %v2908_v11, %v2629_v60  ;;  %v1092_v41 = vrot.slane %v2908_v11, %v2876_v25  ;;  %v1175_v40 = vrot.slane %v2908_v11, %v2881_v26 }
 0x464   : > { %v1258_v12 = vrot.slane %v2908_v11, %v2884_v27  ;;  %v1341_v2 = vrot.slane %v2908_v11, %v2889_v43  ;;  %v1424_v46 = vrot.slane %v2908_v11, %v2895_v49  ;;  %v1507_v52 = vrot.slane %v2908_v11, %v2901_v39 }
 0x465   : > { %v2959_v28 = vpop.permute.xlu0 %1003  ;;  %v1590_v54 = vrot.slane %v2908_v11, %v2906_v7 }
 0x466   : > { %v965_v32 = vpop.permute.xlu1 %964 }
 0x467   : > { %v1015_v35 = vrot.slane %v965_v32, %v2634_v62  ;;  %v1097_v63 = vrot.slane %v965_v32, %v2911_v5  ;;  %v1180_v61 = vrot.slane %v965_v32, %v2914_v48  ;;  %v1263_v8 = vrot.slane %v965_v32, %v2917_v44 }
 0x468   : > { %v1346_v13 = vrot.slane %v965_v32, %v2920_v42  ;;  %v1429_v14 = vrot.slane %v965_v32, %v2923_v6  ;;  %v1512_v34 = vrot.slane %v965_v32, %v2928_v36  ;;  %v1595_v50 = vrot.slane %v965_v32, %v2931_v58 }
 0x469   : > { %v1016_v23 = vsel %vm556_vm1, %v1015_v35, %v1011_v53  ;;  %v1099_v24 = vsel %vm1098_vm11, %v1097_v63, %v1092_v41  ;;  %v1182_v33 = vsel %vm1181_vm12, %v1180_v61, %v1175_v40  ;;  %v1265_v45 = vsel %vm1264_vm13, %v1263_v8, %v1258_v12 }
 0x46a   : > { %v2979_v18 = vpop.permute.xlu1 %967  ;;  %v1348_v1 = vsel %vm1347_vm14, %v1346_v13, %v1341_v2  ;;  %v1431_v10 = vsel %vm1430_vm15, %v1429_v14, %v1424_v46  ;;  %v1514_v20 = vsel %vm1513_vm10, %v1512_v34, %v1507_v52  ;;  %v3029_v16 = vsel %vm1596_vm0, %v1595_v50, %v1590_v54 }
 0x46b   : > { %v1020_v38 = vrot.slane %v2979_v18, %v2629_v60  ;;  %v1103_v51 = vrot.slane %v2979_v18, %v2876_v25  ;;  %v1186_v29 = vrot.slane %v2979_v18, %v2881_v26  ;;  %v1269_v11 = vrot.slane %v2979_v18, %v2884_v27 }
 0x46c   : > { %v1352_v53 = vrot.slane %v2979_v18, %v2889_v43  ;;  %v1435_v35 = vrot.slane %v2979_v18, %v2895_v49  ;;  %v1518_v46 = vrot.slane %v2979_v18, %v2901_v39  ;;  %v1601_v22 = vrot.slane %v2979_v18, %v2906_v7 }
 0x46e   : > { %v971_v41 = vpop.permute.xlu1 %970 }
 0x46f   : > { %v1024_v32 = vrot.slane %v971_v41, %v2634_v62  ;;  %v1107_v40 = vrot.slane %v971_v41, %v2911_v5  ;;  %v1190_v12 = vrot.slane %v971_v41, %v2914_v48  ;;  %v1273_v2 = vrot.slane %v971_v41, %v2917_v44 }
 0x470   : > { %v1356_v63 = vrot.slane %v971_v41, %v2920_v42  ;;  %v1439_v61 = vrot.slane %v971_v41, %v2923_v6 }
 0x471   : > { %v1025_v8 = vsel %vm556_vm1, %v1024_v32, %v1020_v38  ;;  %v1108_v13 = vsel %vm1098_vm11, %v1107_v40, %v1103_v51  ;;  %v1191_v14 = vsel %vm1181_vm12, %v1190_v12, %v1186_v29  ;;  %v1274_v19 = vsel %vm1264_vm13, %v1273_v2, %v1269_v11 }
 0x472   : > { %v3023_v21 = vpop.permute.xlu1 %973  ;;  %v1080_v38 = vsel %vm621_vm2, %v1025_v8, %v1016_v23  ;;  %v1522_v51 = vrot.slane %v971_v41, %v2928_v36  ;;  %v1605_v29 = vrot.slane %v971_v41, %v2931_v58  ;;  %v1163_v18 = vsel %vm621_vm2, %v1108_v13, %v1099_v24 }
 0x473   : > { %v1246_v32 = vsel %vm621_vm2, %v1191_v14, %v1182_v33  ;;  %v1329_v52 = vsel %vm621_vm2, %v1274_v19, %v1265_v45  ;;  %v1357_v34 = vsel %vm1347_vm14, %v1356_v63, %v1352_v53  ;;  %v1440_v54 = vsel %vm1430_vm15, %v1439_v61, %v1435_v35 }
 0x474   : > { %v1029_v23 = vrot.slane %v3023_v21, %v2629_v60  ;;  %v1112_v50 = vrot.slane %v3023_v21, %v2876_v25  ;;  %v1195_v41 = vrot.slane %v3023_v21, %v2881_v26  ;;  %v1278_v24 = vrot.slane %v3023_v21, %v2884_v27 }
 0x475   : > { %v1361_v33 = vrot.slane %v3023_v21, %v2889_v43  ;;  %v1444_v19 = vrot.slane %v3023_v21, %v2895_v49  ;;  %v1527_v45 = vrot.slane %v3023_v21, %v2901_v39  ;;  %v1610_v63 = vrot.slane %v3023_v21, %v2906_v7 }
 0x476   : > { %v977_v53 = vpop.permute.xlu1 %976  ;;  %v1412_v8 = vsel %vm621_vm2, %v1357_v34, %v1348_v1  ;;  %v1495_v13 = vsel %vm621_vm2, %v1440_v54, %v1431_v10  ;;  %v1523_v21 = vsel %vm1513_vm10, %v1522_v51, %v1518_v46  ;;  %v1606_v1 = vsel %vm1596_vm0, %v1605_v29, %v1601_v22 }
 0x477   : > { %v1033_v40 = vrot.slane %v977_v53, %v2634_v62  ;;  %v1116_v12 = vrot.slane %v977_v53, %v2911_v5  ;;  %v1199_v2 = vrot.slane %v977_v53, %v2914_v48  ;;  %v1282_v35 = vrot.slane %v977_v53, %v2917_v44 }
 0x478   : > { %v1365_v61 = vrot.slane %v977_v53, %v2920_v42  ;;  %v1448_v15 = vrot.slane %v977_v53, %v2923_v6  ;;  %v1531_v4 = vrot.slane %v977_v53, %v2928_v36  ;;  %v1614_v31 = vrot.slane %v977_v53, %v2931_v58 }
 0x479   : > { %v1034_v14 = vsel %vm556_vm1, %v1033_v40, %v1029_v23  ;;  %v1117_v11 = vsel %vm1098_vm11, %v1116_v12, %v1112_v50  ;;  %v1200_v17 = vsel %vm1181_vm12, %v1199_v2, %v1195_v41  ;;  %v1283_v54 = vsel %vm1264_vm13, %v1282_v35, %v1278_v24 }
 0x47a   : > { %v3070_v47 = vpop.permute.xlu1 %979  ;;  %v1081_v10 = vsel %vm623_vm3, %v1034_v14, %v1080_v38  ;;  %v1164_v34 = vsel %vm623_vm3, %v1117_v11, %v1163_v18  ;;  %v1366_v23 = vsel %vm1347_vm14, %v1365_v61, %v1361_v33  ;;  %v1247_v50 = vsel %vm623_vm3, %v1200_v17, %v1246_v32 }
 0x47b   : > { %v1038_v41 = vrot.slane %v3070_v47, %v2629_v60  ;;  %v1121_v53 = vrot.slane %v3070_v47, %v2876_v25  ;;  %v1204_v46 = vrot.slane %v3070_v47, %v2881_v26  ;;  %v1287_v22 = vrot.slane %v3070_v47, %v2884_v27 }
 0x47c   : > { %v1370_v38 = vrot.slane %v3070_v47, %v2889_v43  ;;  %v1453_v51 = vrot.slane %v3070_v47, %v2895_v49  ;;  %v1449_v17 = vsel %vm1430_vm15, %v1448_v15, %v1444_v19  ;;  %v1536_v29 = vrot.slane %v3070_v47, %v2901_v39 }
 0x47d   : > { %v1619_v11 = vrot.slane %v3070_v47, %v2906_v7  ;;  %v1330_v32 = vsel %vm623_vm3, %v1283_v54, %v1329_v52  ;;  %v1413_v24 = vsel %vm623_vm3, %v1366_v23, %v1412_v8  ;;  %v1496_v12 = vsel %vm623_vm3, %v1449_v17, %v1495_v13 }
 0x47e   : > { %v3096_v18 = vpop.permute.xlu1 %982  ;;  %v3110_v2 = vsel %vm1513_vm10, %v1531_v4, %v1527_v45  ;;  %v1578_v52 = vsel %vm621_vm2, %v1523_v21, %v1514_v20  ;;  %v3114_v35 = vsel %vm1596_vm0, %v1614_v31, %v1610_v63  ;;  %v3122_v54 = vsel %vm621_vm2, %v1606_v1, %v3029_v16 }
 0x47f   : > { %v1042_v33 = vrot.slane %v3096_v18, %v2634_v62  ;;  %v1125_v40 = vrot.slane %v3096_v18, %v2911_v5  ;;  %v1208_v15 = vrot.slane %v3096_v18, %v2914_v48  ;;  %v1291_v19 = vrot.slane %v3096_v18, %v2917_v44 }
 0x480   : > { %v1374_v14 = vrot.slane %v3096_v18, %v2920_v42  ;;  %v1457_v20 = vrot.slane %v3096_v18, %v2923_v6  ;;  %v1540_v31 = vrot.slane %v3096_v18, %v2928_v36  ;;  %vm1675_vm2 = vcmask 654336  }
 0x481   : > { %v1043_v61 = vsel %vm556_vm1, %v1042_v33, %v1038_v41  ;;  %v1126_v8 = vsel %vm1098_vm11, %v1125_v40, %v1121_v53  ;;  %v1209_v13 = vsel %vm1181_vm12, %v1208_v15, %v1204_v46  ;;  %v1292_v4 = vsel %vm1264_vm13, %v1291_v19, %v1287_v22 }
 0x482   : > { %v3130_v45 = vpop.permute.xlu1 %988  ;;  %v1082_v23 = vsel %vm625_vm4, %v1043_v61, %v1081_v10  ;;  %v1165_v41 = vsel %vm625_vm4, %v1126_v8, %v1164_v34  ;;  %v1623_v53 = vrot.slane %v3096_v18, %v2931_v58  ;;  %v1331_v15 = vsel %vm625_vm4, %v1292_v4, %v1330_v32 }
 0x483   : > { %v1051_v63 = vrot.slane %v3130_v45, %v2634_v62  ;;  %v1134_v21 = vrot.slane %v3130_v45, %v2911_v5  ;;  %v1217_v16 = vrot.slane %v3130_v45, %v2914_v48  ;;  %v1300_v1 = vrot.slane %v3130_v45, %v2917_v44 }
 0x484   : > { %v1383_v46 = vrot.slane %v3130_v45, %v2920_v42  ;;  %v1466_v33 = vrot.slane %v3130_v45, %v2923_v6  ;;  %v1549_v19 = vrot.slane %v3130_v45, %v2928_v36  ;;  %v1458_v4 = vsel %vm1430_vm15, %v1457_v20, %v1453_v51 }
 0x485   : > { %v1052_v22 = vsel %vm556_vm1, %v1051_v63, %v1047_v30  ;;  %v1135_v17 = vsel %vm1098_vm11, %v1134_v21, %v1130_v59  ;;  %v1218_v10 = vsel %vm1181_vm12, %v1217_v16, %v1213_v56  ;;  %v1301_v34 = vsel %vm1264_vm13, %v1300_v1, %v1296_v3 }
 0x486   : > { %v3164_v40 = vpop.permute.xlu1 %991  ;;  %v1248_v30 = vsel %vm625_vm4, %v1209_v13, %v1247_v50  ;;  %v1375_v59 = vsel %vm1347_vm14, %v1374_v14, %v1370_v38  ;;  %v1083_v56 = vsel %vm3457_vm5, %v1052_v22, %v1082_v23  ;;  %v1166_v61 = vsel %vm3457_vm5, %v1135_v17, %v1165_v41 }
 0x487   : > { %v1249_v3 = vsel %vm3457_vm5, %v1218_v10, %v1248_v30  ;;  %v1056_v8 = vrot.slane %v3164_v40, %v2629_v60  ;;  %v1139_v63 = vrot.slane %v3164_v40, %v2876_v25  ;;  %v1332_v50 = vsel %vm3457_vm5, %v1301_v34, %v1331_v15 }
 0x488   : > { %v1384_v38 = vsel %vm1347_vm14, %v1383_v46, %v1379_v37  ;;  %v1222_v32 = vrot.slane %v3164_v40, %v2881_v26  ;;  %v1305_v14 = vrot.slane %v3164_v40, %v2884_v27  ;;  %v1414_v13 = vsel %vm625_vm4, %v1375_v59, %v1413_v24 }
 0x489   : > { %v1388_v21 = vrot.slane %v3164_v40, %v2889_v43  ;;  %v1471_v16 = vrot.slane %v3164_v40, %v2895_v49  ;;  %v1415_v37 = vsel %vm3457_vm5, %v1384_v38, %v1414_v13  ;;  %v3473_v23 = vrot.slane %v2903_v9, %v2895_v49 }
 0x48a   : > { %v3193_v1 = vpop.permute.xlu1 %994  ;;  %v1497_v10 = vsel %vm625_vm4, %v1458_v4, %v1496_v12  ;;  %v1541_v34 = vsel %vm1513_vm10, %v1540_v31, %v1536_v29  ;;  %v3474_v13 = vrot.slane %v2903_v9, %v2901_v39  ;;  %v1554_v4 = vrot.slane %v3164_v40, %v2901_v39 }
 0x48b   : > { %v1467_v41 = vsel %vm1430_vm15, %v1466_v33, %v3473_v23  ;;  %v1060_v24 = vrot.slane %v3193_v1, %v2634_v62  ;;  %v1143_v51 = vrot.slane %v3193_v1, %v2911_v5  ;;  %v1226_v20 = vrot.slane %v3193_v1, %v2914_v48 }
 0x48c   : > { %v1309_v46 = vrot.slane %v3193_v1, %v2917_v44  ;;  %v1392_v22 = vrot.slane %v3193_v1, %v2920_v42  ;;  %v1475_v17 = vrot.slane %v3193_v1, %v2923_v6  ;;  %v1550_v12 = vsel %vm1513_vm10, %v1549_v19, %v3474_v13 }
 0x48d   : > { %v1061_v33 = vsel %vm556_vm1, %v1060_v24, %v1056_v8  ;;  %v1144_v30 = vsel %vm1098_vm11, %v1143_v51, %v1139_v63  ;;  %v1227_v15 = vsel %vm1181_vm12, %v1226_v20, %v1222_v32  ;;  %v1558_v29 = vrot.slane %v3193_v1, %v2928_v36 }
 0x48e   : > { %v1310_v59 = vsel %vm1264_vm13, %v1309_v46, %v1305_v14  ;;  %v3221_v38 = vpop.permute.xlu1 %997  ;;  %v1579_v31 = vsel %vm623_vm3, %v3110_v2, %v1578_v52  ;;  %v1084_v8 = vsel %vm3456_vm6, %v1061_v33, %v1083_v56  ;;  %v1167_v63 = vsel %vm3456_vm6, %v1144_v30, %v1166_v61 }
 0x48f   : > { %v1250_v32 = vsel %vm3456_vm6, %v1227_v15, %v1249_v3  ;;  %v1498_v14 = vsel %vm3457_vm5, %v1467_v41, %v1497_v10  ;;  %v1065_v19 = vrot.slane %v3221_v38, %v2629_v60  ;;  %v1333_v23 = vsel %vm3456_vm6, %v1310_v59, %v1332_v50 }
 0x490   : > { %v1393_v24 = vsel %vm1347_vm14, %v1392_v22, %v1388_v21  ;;  %v1476_v51 = vsel %vm1430_vm15, %v1475_v17, %v1471_v16  ;;  %v1148_v2 = vrot.slane %v3221_v38, %v2876_v25  ;;  %v1231_v52 = vrot.slane %v3221_v38, %v2881_v26 }
 0x491   : > { %v1314_v56 = vrot.slane %v3221_v38, %v2884_v27  ;;  %v1397_v61 = vrot.slane %v3221_v38, %v2889_v43  ;;  %v1416_v50 = vsel %vm3456_vm6, %v1393_v24, %v1415_v37  ;;  %v1480_v21 = vrot.slane %v3221_v38, %v2895_v49 }
 0x492   : > { %v3250_v3 = vpop.permute.xlu1 %1000  ;;  %v1499_v16 = vsel %vm3456_vm6, %v1476_v51, %v1498_v14  ;;  %v3257_v41 = vsel %vm1513_vm10, %v1558_v29, %v1554_v4  ;;  %v1563_v37 = vrot.slane %v3221_v38, %v2901_v39  ;;  %v1580_v33 = vsel %vm625_vm4, %v1541_v34, %v1579_v31 }
 0x493   : > { %v1069_v20 = vrot.slane %v3250_v3, %v2634_v62  ;;  %v1152_v46 = vrot.slane %v3250_v3, %v2911_v5  ;;  %v1235_v22 = vrot.slane %v3250_v3, %v2914_v48  ;;  %v1318_v17 = vrot.slane %v3250_v3, %v2917_v44 }
 0x494   : > { %v1401_v10 = vrot.slane %v3250_v3, %v2920_v42  ;;  %v1624_v30 = vsel %vm1596_vm0, %v1623_v53, %v1619_v11  ;;  %v1484_v15 = vrot.slane %v3250_v3, %v2923_v6  ;;  %v1567_v59 = vrot.slane %v3250_v3, %v2928_v36 }
 0x495   : > { %v1632_v13 = vrot.slane %v3130_v45, %v2931_v58  ;;  %v1637_v34 = vrot.slane %v3164_v40, %v2906_v7  ;;  %v1070_v47 = vsel %vm556_vm1, %v1069_v20, %v1065_v19  ;;  %v1153_v18 = vsel %vm1098_vm11, %v1152_v46, %v1148_v2 }
 0x496   : > { %v1007_v4 = vpop.permute.xlu1 %1006  ;;  %v1236_v11 = vsel %vm1181_vm12, %v1235_v22, %v1231_v52  ;;  %v1581_v53 = vsel %vm3457_vm5, %v1550_v12, %v1580_v33  ;;  %v1319_v19 = vsel %vm1264_vm13, %v1318_v17, %v1314_v56  ;;  %v1402_v51 = vsel %vm1347_vm14, %v1401_v10, %v1397_v61 }
 0x497   : > { %v1078_v29 = vrot.slane %v1007_v4, %v2634_v62  ;;  %v1161_v31 = vrot.slane %v1007_v4, %v2911_v5  ;;  %v1244_v45 = vrot.slane %v1007_v4, %v2914_v48  ;;  %v1327_v14 = vrot.slane %v1007_v4, %v2917_v44 }
 0x498   : > { %v1410_v40 = vrot.slane %v1007_v4, %v2920_v42  ;;  %v1493_v24 = vrot.slane %v1007_v4, %v2923_v6  ;;  %v3475_v12 = vmul.u32 16, %v2622_v57  ;;  %v3478_v5 = vrot.slane %v2959_v28, %v2629_v60 }
 0x499   : > { %v3479_v44 = vrot.slane %v2959_v28, %v2876_v25  ;;  %v3480_v57 = vrot.slane %v2959_v28, %v2881_v26  ;;  %v3481_v2 = vrot.slane %v2959_v28, %v2884_v27  ;;  %vm1677_vm5 = vcmask 785408  }
 0x49a   : > { %vm3302_vm6 = vcmp.ge.s32.totalorder %v2616_v55, %v3475_v12  ;;  %v1079_v48 = vsel %vm556_vm1, %v1078_v29, %v3478_v5  ;;  %v1085_v60 = vsel %vm631_vm7, %v1070_v47, %v1084_v8  ;;  %v1168_v56 = vsel %vm631_vm7, %v1153_v18, %v1167_v63 }
 0x49b   : > { %v1162_v42 = vsel %vm1098_vm11, %v1161_v31, %v3479_v44  ;;  %v1245_v6 = vsel %vm1181_vm12, %v1244_v45, %v3480_v57  ;;  %v1328_v52 = vsel %vm1264_vm13, %v1327_v14, %v3481_v2  ;;  %v1251_v61 = vsel %vm631_vm7, %v1236_v11, %v1250_v32 }
 0x49c   : > { %v1485_v25 = vsel %vm1430_vm15, %v1484_v15, %v1480_v21  ;;  %vm1679_vm1 = vcmask 916480   ;;  %v1086_v20 = vsel %vm633_vm8, %v1079_v48, %v1085_v60  ;;  %v1169_v26 = vsel %vm633_vm8, %v1162_v42, %v1168_v56 }
 0x49d   : > { %v1334_v46 = vsel %vm631_vm7, %v1319_v19, %v1333_v23  ;;  %v3482_v27 = vrot.slane %v2959_v28, %v2889_v43  ;;  %v1252_v8 = vsel %vm633_vm8, %v1245_v6, %v1251_v61  ;;  %v1417_v32 = vsel %vm631_vm7, %v1402_v51, %v1416_v50 }
 0x49e   : > { %v1335_v63 = vsel %vm633_vm8, %v1328_v52, %v1334_v46  ;;  %v1576_v21 = vrot.slane %v1007_v4, %v2928_v36  ;;  %v3483_v10 = vrot.slane %v2959_v28, %v2895_v49  ;;  %v1500_v33 = vsel %vm631_vm7, %v1485_v25, %v1499_v16 }
 0x49f   : > { %v1411_v22 = vsel %vm1347_vm14, %v1410_v40, %v3482_v27  ;;  %v1641_v43 = vrot.slane %v3193_v1, %v2931_v58  ;;  %v3484_v15 = vrot.slane %v2903_v9, %v2906_v7  ;;  %v1646_v36 = vrot.slane %v3221_v38, %v2906_v7 }
 0x4a0   : > { %v1418_v17 = vsel %vm633_vm8, %v1411_v22, %v1417_v32  ;;  %v1494_v23 = vsel %vm1430_vm15, %v1493_v24, %v3483_v10  ;;  %v1650_v50 = vrot.slane %v3250_v3, %v2931_v58  ;;  %v1659_v49 = vrot.slane %v1007_v4, %v2931_v58 }
 0x4a1   : > { %v1633_v47 = vsel %vm1596_vm0, %v1632_v13, %v3484_v15  ;;  %v1568_v18 = vsel %vm1513_vm10, %v1567_v59, %v1563_v37  ;;  %v1642_v16 = vsel %vm1596_vm0, %v1641_v43, %v1637_v34  ;;  %v1662_v1 = vsel %vm623_vm3, %v3114_v35, %v3122_v54 }
 0x4a2   : > { %v1669_v9 = vsel %vm636_vm9, %v1086_v20, %v1169_v26  ;;  %v3485_v13 = vrot.slane %v2959_v28, %v2901_v39  ;;  %v1651_v11 = vsel %vm1596_vm0, %v1650_v50, %v1646_v36  ;;  %v1663_v3 = vsel %vm625_vm4, %v1624_v30, %v1662_v1 }
 0x4a3   : > { %vm3486_vm11 = vcmask 261120   ;;  %vm3487_vm12 = vcmask 1045509   ;;  %v3488_v59 = vrot.slane %v2959_v28, %v2906_v7  ;;  %vm3489_vm3 = vcmask 1044484  }
 0x4a4   : > { %v1577_v38 = vsel %vm1513_vm10, %v1576_v21, %v3485_v13  ;;  %v1671_v58 = vsel %vm3486_vm11, %v1669_v9, %v1252_v8  ;;  %v1582_v37 = vsel %vm3487_vm12, %v3257_v41, %v1581_v53  ;;  %v1664_v39 = vsel %vm3489_vm3, %v1633_v47, %v1663_v3  ;;  %vm3491_vm4 = vmmov %vm3487_vm12 }
 0x4a5   : > { %v1660_v35 = vsel %vm1596_vm0, %v1659_v49, %v3488_v59  ;;  %vm3490_vm9 = vcmask 392192   ;;  %v1501_v34 = vsel %vm633_vm8, %v1494_v23, %v1500_v33  ;;  %v1583_v30 = vsel %vm631_vm7, %v1568_v18, %v1582_v37 }
 0x4a6   : > { %v1673_v54 = vsel %vm3490_vm9, %v1671_v58, %v1335_v63  ;;  %v1665_v4 = vsel %vm3491_vm4, %v1642_v16, %v1664_v39  ;;  %vm3492_vm13 = vcmask 523264   ;;  %v1584_v41 = vsel %vm633_vm8, %v1577_v38, %v1583_v30 }
 0x4a7   : > { %v1674_v29 = vsel %vm3492_vm13, %v1673_v54, %v1418_v17  ;;  %v1666_v7 = vsel %vm631_vm7, %v1651_v11, %v1665_v4  ;;  %vm3493_vm0 = vcmp.lt.s32.totalorder %v2616_v55, %v2935_v0 }
 0x4a8   : > { %v1676_v28 = vsel %vm1675_vm2, %v1674_v29, %v1501_v34  ;;  %vm1684_vm14 = vmand %vm3302_vm6, %vm3493_vm0  ;;  %v1667_v53 = vsel %vm633_vm8, %v1660_v35, %v1666_v7 }
 0x4a9   : > { %v1678_v31 = vsel %vm1677_vm5, %v1676_v28, %v1584_v41  ;;  %vm3494_vm6 = vmmov %vm3492_vm13 }
 0x4aa   : > { %v1680_v45 = vsel %vm1679_vm1, %v1678_v31, %v1667_v53 }
 0x4ab   : > { %2002 = vmatmul.mubr.msk.f32.vlgmr.msra.gmra.mrb[0].mxu1 %vm1684_vm14, %v1680_v45 }
 0x57e   : > { %v1752_v55 = vpop.f32.mrb[0].mxu1 }
 0x57f   : > { %1756 = vst.msk [vmem:[%s231_s29] sm:$0xff] %vm3494_vm6, %v1752_v55  ;;  %v2003_v0 = vpop.f32.mrb[1].mxu1 }
 0x580   : > { %2228 = shalt.err (!%p2225_p7)
}
 0x581   : > { %s2229_s11 = scalar_lea.hbm %s3397_s8, 128  ;;  %s2233_s23 = scalar_lea.hbm %s3446_s4, 256 }
 0x582   : > { %p2230_p9 = scmp.ne.s32.totalorder %s3397_s8, %s2229_s11  ;;  %p2234_p5 = scmp.lt.u32.totalorder %s3397_s8, %s3446_s4 }
 0x583   : > { %p2235_p11 = scmp.lt.u32.totalorder %s2233_s23, %s2229_s11  ;;  %p2237_p4 = scmp.lt.u32.totalorder %s2229_s11, %s3397_s8 }
 0x584   : > { %p2231_p1 = pnand %p2230_p9, %p2415_p12 }
 0x585   : > { %p2236_p2 = por %p2235_p11, %p2234_p5 }
 0x586   : > { %p2232_p0 = pneg %p2231_p1 }
 0x587   : > { %p2238_p6 = por %p2237_p4, %p2236_p2 }
 0x589   : > { %p2239_p8 = pnand %p2238_p6, %p2232_p0 }
 0x58b   : > { %2242 = shalt.err (!%p2239_p8)
}
 0x58c   : > { %2050 = dma.vmem_to_hbm [thread:$0]  (%p2415_p12), %s3399_s10, 128, %s3397_s8, %s1758_s25  }
 0x58d PF: > { %s1783_s9 = sand.u32 1, %s2273_s15   ;;  %p3495_p10 = scmp.ne.s32.totalorder %s3459_s22, 0 }
 0x58e   : > { %p3496_p13 = scmp.ge.s32.totalorder %s2285_s18, 2  ;;  %s1784_s28 = scalar_lea.sflag [#allocation4], %s1783_s9 }
 0x590   : > { %p2061_p3 = pnand %p3496_p13, %p3495_p10 }
 0x592   : > { %2268 = dma.done.wait (!%p2061_p3), %s1784_s28, 128  }
 0x593   : > { %2270 = vsyncadd (!%p2061_p3), %s1784_s28, 4294967168  ;;  %p18_p7 = scmp.ge.s32.totalorder %s2377_s27, 4   ;;  %s3497_s15 = smov %s2277_s16 }
 0x594   : > { %s3498_s16 = smov %s2281_s17  ;;  %s3499_s17 = smov %s2411_s24 }
 0x595   : > { %s3500_s18 = smov %s2377_s27  ;;  %20 = sbr.rel (!%p18_p7) target bundleno = 6 (0x6), region = 85 }
 0x59c   :  { %1789 = vsyncpa [#allocation3], 1 }
 0x59d   :  { %1791 = vsyncpa [#allocation3 + $0x1], 1 }
 0x59e   :  { %1792 = vsyncpa [#allocation6], 1 }
 0x59f   :  { %1793 = vsyncpa [#allocation4], 1 }
 0x5a0   :  { %1795 = vsyncpa [#allocation4 + $0x1], 1 }

</bundles_post_ra>
